<compile_context>
chip_gen: v5e
topology: v5e:2x2
jax: 0.10.0
libtpu: 0.0.40
codegen_flags: <defaults>
</compile_context>

<pallas_src>
from functools import partial

import jax
import jax.numpy as jnp
from jax.experimental import pallas as pl
from jax.experimental.pallas import tpu as pltpu

EPS = 1e-12
MXU_PAD = 256            # pad 2H to a multiple of 256 (v6e/v7x MXU tile; fine on v5e)
HEADROOM = 10 * 2**20    # slack for compiler-internal scratch / live temporaries


def _round_up(a, b):
    return (a + b - 1) // b * b


# ---------------- hardware / capability probes ----------------

def _vmem_capacity_bytes():
    """Physical VMEM per core; conservative 64 MiB fallback (v7x floor)."""
    try:
        cap = int(pltpu.get_tpu_info().vmem_capacity_bytes)
        if cap > 0:
            return cap
    except Exception:
        pass
    return 64 * 2**20


_BUFFERED1_OK = None


def _buffered1_supported():
    """Probe whether grid-invariant inputs may be single-buffered via
    pipeline_mode=pl.Buffered(1) (halves resident-parameter VMEM)."""
    global _BUFFERED1_OK
    if _BUFFERED1_OK is None:
        try:
            def k(a_ref, c_ref, o_ref):
                o_ref[...] = a_ref[...] + c_ref[...]

            a = jnp.arange(16 * 128, dtype=jnp.float32).reshape(16, 128)
            c = jnp.ones((8, 128), jnp.float32)
            r = pl.pallas_call(
                k,
                out_shape=jax.ShapeDtypeStruct((16, 128), jnp.float32),
                grid_spec=pltpu.PrefetchScalarGridSpec(
                    num_scalar_prefetch=0,
                    grid=(2,),
                    in_specs=[pl.BlockSpec((8, 128), lambda i: (i, 0)),
                              pl.BlockSpec((8, 128), lambda i: (0, 0),
                                           pipeline_mode=pl.Buffered(1))],
                    out_specs=pl.BlockSpec((8, 128), lambda i: (i, 0)),
                ),
                compiler_params=pltpu.CompilerParams(
                    dimension_semantics=("parallel",)),
            )(a, c)
            r = jax.block_until_ready(r)
            _BUFFERED1_OK = bool(jnp.allclose(r, a + 1.0))
        except Exception:
            _BUFFERED1_OK = False
    return _BUFFERED1_OK


# ---------------- fused Pallas kernel ----------------

def _stack_kernel(h2, n_blocks, has_final, x_ref, *refs):
    """refs = n_blocks x (w, b, gamma, beta) [+ (w_final, b_final)] + out_ref."""
    o_ref = refs[-1]
    pr = refs[:-1]
    inv_h2 = jnp.float32(1.0 / h2)

    # bf16 MXU operands (cast once per tile after the DMA); f32 accumulation/LN math.
    x = x_ref[...].astype(jnp.bfloat16)

    for i in range(n_blocks):                                  # statically unrolled
        w_ref, b_ref, g_ref, be_ref = pr[4 * i:4 * i + 4]
        # Linear (bf16 x bf16 -> f32 accumulator on the MXU)
        y = jnp.dot(x, w_ref[...], preferred_element_type=jnp.float32) + b_ref[...]
        # ReLU (padded lanes stay exactly 0: zero weight columns + zero bias pad)
        y = jnp.maximum(y, 0.0)
        # LayerNorm (TF style, eps inside sqrt, biased variance), one-pass statistics.
        # Padded lanes of y are exactly 0, so sums over the padded width equal sums
        # over the real 2H features; divide by the true 2H.
        s1 = jnp.sum(y, axis=-1, keepdims=True)
        s2 = jnp.sum(y * y, axis=-1, keepdims=True)
        u = s1 * inv_h2
        var = jnp.maximum(s2 * inv_h2 - u * u, 0.0)
        yn = (y - u) * jax.lax.rsqrt(var + jnp.float32(EPS))   # EUP rsqrt
        # gamma/beta pads are 0 => padded activation lanes are exactly 0 again.
        x = (g_ref[...] * yn + be_ref[...]).astype(jnp.bfloat16)
        # Dropout(trans_drop): identity at inference.
        # TODO(synk): training-mode stochastic dropout not implemented.

    if has_final:
        wf_ref, bf_ref = pr[4 * n_blocks], pr[4 * n_blocks + 1]
        out = jnp.dot(x, wf_ref[...], preferred_element_type=jnp.float32) + bf_ref[...]
        o_ref[...] = out.astype(o_ref.dtype)
    else:
        o_ref[...] = x.astype(o_ref.dtype)                     # bf16 mid-stack activation


# ---------------- parameter construction & packing ----------------

def init_output_layer_params(key, hidden_dim, num_answer=1):
    """Logical (unpadded, f32) parameters — also used by the pure-JAX references."""
    h2 = hidden_dim * 2
    dims = [(hidden_dim, h2)] + [(h2, h2)] * 4                 # 5 Linear+ReLU+LN blocks
    params = {"blocks": [], "final": None}
    for (din, dout) in dims:
        key, kw, kb = jax.random.split(key, 3)
        scale = 1.0 / jnp.sqrt(din)
        params["blocks"].append(dict(
            w=jax.random.uniform(kw, (din, dout), jnp.float32, -scale, scale),
            b=jax.random.uniform(kb, (dout,), jnp.float32, -scale, scale),
            gamma=jnp.ones((dout,), jnp.float32),
            beta=jnp.zeros((dout,), jnp.float32),
        ))
    key, kw, kb = jax.random.split(key, 3)
    scale = 1.0 / jnp.sqrt(h2)
    params["final"] = dict(
        w=jax.random.uniform(kw, (h2, num_answer), jnp.float32, -scale, scale),
        b=jax.random.uniform(kb, (num_answer,), jnp.float32, -scale, scale),
    )
    return params


def pack_output_layer_params(params, pad_to=MXU_PAD):
    """One-time pack: pad 2H up to a 256-lane multiple, weights -> bf16, biases /
    gamma / beta stay f32 (added post f32 accumulation). All pads are 0."""
    h2 = params["blocks"][0]["w"].shape[1]
    np_ = _round_up(h2, pad_to)
    packed = {"h2": int(h2), "np": int(np_), "blocks": [], "final": None}
    for li, blk in enumerate(params["blocks"]):
        din, dout = blk["w"].shape
        din_p = din if li == 0 else np_                        # layer-1 keeps true K = H
        w = jnp.zeros((din_p, np_), jnp.float32).at[:din, :dout].set(blk["w"])
        b = jnp.zeros((1, np_), jnp.float32).at[0, :dout].set(blk["b"])
        g = jnp.zeros((1, np_), jnp.float32).at[0, :dout].set(blk["gamma"])
        be = jnp.zeros((1, np_), jnp.float32).at[0, :dout].set(blk["beta"])
        packed["blocks"].append((w.astype(jnp.bfloat16), b, g, be))
    wf_raw, bf_raw = params["final"]["w"], params["final"]["b"]
    na = wf_raw.shape[1]
    wf = jnp.zeros((np_, na), jnp.float32).at[:h2, :].set(wf_raw).astype(jnp.bfloat16)
    bf = bf_raw.reshape(1, na).astype(jnp.float32)
    packed["final"] = (wf, bf)
    return packed


# ---------------- VMEM sizing / tile selection ----------------

def _nbytes(arrs):
    return sum(int(a.size) * a.dtype.itemsize for a in arrs)


def _call_vmem_bytes(param_bytes, tm, k_in, in_isz, out_cols, out_isz, np_, pmul):
    act = 6 * tm * np_ * 4                                       # live f32 temporaries
    io = 2 * tm * (k_in * in_isz + out_cols * out_isz)           # double-buffered I/O tiles
    return pmul * param_bytes + act + io


def _choose_tm(budget, param_bytes, k_in, in_isz, out_cols, out_isz, np_, pmul, tm_cap):
    cands = sorted({tm_cap, 512, 384, 256, 128, 64, 32, 16}, reverse=True)
    for tm in cands:
        if tm > tm_cap or tm % 8 != 0 or tm <= 0:
            continue
        if _call_vmem_bytes(param_bytes, tm, k_in, in_isz,
                            out_cols, out_isz, np_, pmul) <= budget:
            return tm
    return None


# ---------------- pallas_call wrapper ----------------

def _run_stack(h2, x2d, blocks, final, tm, out_dtype, vmem_limit, buf1):
    m_pad, k_in = x2d.shape
    np_ = blocks[0][0].shape[1]

    def inv_spec(shape):
        # Grid-invariant parameter block: VMEM-resident, single-buffered if supported.
        if buf1:
            return pl.BlockSpec(shape, lambda i: (0, 0), pipeline_mode=pl.Buffered(1))
        return pl.BlockSpec(shape, lambda i: (0, 0))

    flat = []
    in_specs = [pl.BlockSpec((tm, k_in), lambda i: (i, 0))]      # row tile of tokens
    for (w, b, g, be) in blocks:
        flat += [w, b, g, be]
        in_specs += [inv_spec(w.shape), inv_spec(b.shape),
                     inv_spec(g.shape), inv_spec(be.shape)]
    if final is not None:
        wf, bf = final
        flat += [wf, bf]
        in_specs += [inv_spec(wf.shape), inv_spec(bf.shape)]
        out_cols = wf.shape[1]
    else:
        out_cols = np_

    return pl.pallas_call(
        partial(_stack_kernel, h2, len(blocks), final is not None),
        out_shape=jax.ShapeDtypeStruct((m_pad, out_cols), out_dtype),
        grid_spec=pltpu.PrefetchScalarGridSpec(
            num_scalar_prefetch=0,
            grid=(m_pad // tm,),
            in_specs=in_specs,
            out_specs=pl.BlockSpec((tm, out_cols), lambda i: (i, 0)),
        ),
        compiler_params=pltpu.CompilerParams(
            dimension_semantics=("parallel",),   # row tiles independent (megacore shard)
            vmem_limit_bytes=int(vmem_limit),
        ),
    )(x2d, *flat)


# ---------------- forward ----------------

def output_layer_forward(packed, hidden_states, *, tm_max=512):
    B, S, H = hidden_states.shape
    M = B * S
    x = hidden_states.reshape(M, H)                              # cast to bf16 in-kernel

    h2, np_ = packed["h2"], packed["np"]
    blocks = packed["blocks"]
    wf, bf = packed["final"]
    num_answer = wf.shape[1]

    buf1 = _buffered1_supported()
    pmul = 1 if buf1 else 2

    cap = _vmem_capacity_bytes()
    hard_cap = int(0.85 * cap)                                   # never request above this
    budget = max(4 * 2**20, hard_cap - HEADROOM)                 # what must fit

    in_isz = x.dtype.itemsize
    tm_cap = min(int(tm_max), _round_up(M, 8))

    all_pb = _nbytes([p for blk in blocks for p in blk] + [wf, bf])
    tm = _choose_tm(budget, all_pb, H, in_isz, num_answer, 4, np_, pmul, tm_cap)

    if tm is not None:
        plan = [(blocks, (wf, bf), jnp.float32)]                 # single fused call
    else:
        # Split-stack fallback (e.g. large H on v7x's 64 MiB VMEM): blocks 1-3, then
        # blocks 4-5 + head; mid activation round-trips HBM in bf16 (bit-identical
        # to the fused path, which re-casts to bf16 at every layer boundary anyway).
        n1 = 3
        b1, b2 = blocks[:n1], blocks[n1:]
        pb1 = _nbytes([p for blk in b1 for p in blk])
        pb2 = _nbytes([p for blk in b2 for p in blk] + [wf, bf])
        tm1 = _choose_tm(budget, pb1, H, in_isz, np_, 2, np_, pmul, tm_cap)
        tm2 = _choose_tm(budget, pb2, np_, 2, num_answer, 4, np_, pmul, tm_cap)
        tm = min(tm1 or 16, tm2 or 16)
        plan = [(b1, None, jnp.bfloat16), (b2, (wf, bf), jnp.float32)]

    # Prefer >= 2 row tiles so the "parallel" axis can shard across v7x's two
    # TensorCores (harmless on single-TC v5e/v6e).
    if len(plan) == 1 and _round_up(M, tm) // tm < 2 and tm > 8:
        tm = max(8, _round_up((M + 1) // 2, 8))

    m_pad = _round_up(M, tm)
    if m_pad != M:
        x = jnp.pad(x, ((0, m_pad - M), (0, 0)))

    out = x
    for blks, fin, odtype in plan:
        k_in = out.shape[1]
        pb = _nbytes([p for blk in blks for p in blk] +
                     (list(fin) if fin is not None else []))
        out_cols = fin[0].shape[1] if fin is not None else np_
        # Request generously (assume double-buffering worst case) but cap below
        # physical VMEM of the current chip.
        need = _call_vmem_bytes(pb, tm, k_in, out.dtype.itemsize, out_cols,
                                jnp.dtype(odtype).itemsize, np_, 2)
        vmem_limit = min(hard_cap, max(32 * 2**20, need + HEADROOM))
        out = _run_stack(h2, out, blks, fin, tm, odtype, vmem_limit, buf1)

    return out[:M].reshape(B, S, num_answer)


# ---------------- pure-JAX references ----------------

def output_layer_reference_f32(params, hidden_states):
    """Full f32 reference of the original PyTorch module (two-pass LN)."""
    B, S, H = hidden_states.shape
    x = hidden_states.reshape(B * S, H).astype(jnp.float32)
    for blk in params["blocks"]:
        y = x @ blk["w"] + blk["b"]
        y = jnp.maximum(y, 0.0)
        u = jnp.mean(y, axis=-1, keepdims=True)
        s = jnp.mean((y - u) ** 2, axis=-1, keepdims=True)
        y = (y - u) / jnp.sqrt(s + EPS)
        x = blk["gamma"] * y + blk["beta"]
    y = x @ params["final"]["w"] + params["final"]["b"]
    return y.reshape(B, S, -1)


def output_layer_reference_matched(packed, hidden_states):
    """Matched-precision, matched-math reference: padded bf16 operands, f32
    accumulation, one-pass LN statistics — mirrors the kernel exactly."""
    B, S, H = hidden_states.shape
    h2 = packed["h2"]
    inv_h2 = jnp.float32(1.0 / h2)
    x = hidden_states.reshape(B * S, H).astype(jnp.bfloat16)
    for (w, b, g, be) in packed["blocks"]:
        y = jnp.dot(x, w, preferred_element_type=jnp.float32) + b
        y = jnp.maximum(y, 0.0)
        u = jnp.sum(y, axis=-1, keepdims=True) * inv_h2
        var = jnp.maximum(jnp.sum(y * y, axis=-1, keepdims=True) * inv_h2 - u * u, 0.0)
        yn = (y - u) * jax.lax.rsqrt(var + jnp.float32(EPS))
        x = (g * yn + be).astype(jnp.bfloat16)
    wf, bf = packed["final"]
    y = jnp.dot(x, wf, preferred_element_type=jnp.float32) + bf
    return y.reshape(B, S, -1)


if __name__ == "__main__":
    key = jax.random.PRNGKey(0)
    hidden_dim, num_answer = 32, 1
    B, S = 2, 8

    k_in, k_par = jax.random.split(key)
    hidden_states = jax.random.normal(k_in, (B, S, hidden_dim), jnp.float32)
    params = init_output_layer_params(k_par, hidden_dim, num_answer)
    packed = pack_output_layer_params(params)

    out = output_layer_forward(packed, hidden_states)
    out = jax.block_until_ready(out)
    assert out.shape == (B, S, num_answer), out.shape

    # Tight check: kernel vs matched-precision / matched-math reference.
    ref_matched = output_layer_reference_matched(packed, hidden_states)
    err_m = float(jnp.max(jnp.abs(out - ref_matched)))
    assert jnp.allclose(out, ref_matched, atol=1e-3, rtol=1e-3), err_m

    # Sanity check: kernel vs full-f32 reference (bf16 MXU operands => looser tolerance).
    ref_f32 = output_layer_reference_f32(params, hidden_states)
    err_f = float(jnp.max(jnp.abs(out - ref_f32)))
    assert jnp.allclose(out, ref_f32, atol=5e-2, rtol=5e-2), err_f

    print("KERNEL_OK")
</pallas_src>

<mosaic_0001>
module attributes {stable_mosaic.version = 11 : i64} {
  func.func @k(%arg0: i32, %arg1: memref<8x128xf32, #tpu.memory_space<vmem>>, %arg2: memref<8x128xf32, #tpu.memory_space<vmem>>, %arg3: memref<8x128xf32, #tpu.memory_space<vmem>>) attributes {dimension_semantics = [#tpu.dimension_semantics<parallel>], iteration_bounds = array<i64: 2>, scalar_prefetch = 0 : i64, scratch_operands = 0 : i64, tpu.core_type = #tpu.core_type<tc>, window_params = [{transform_indices = @transform_0, window_bounds = array<i64: 8, 128>}, {pipeline_mode = #tpu.pipeline_mode<synchronous>, transform_indices = @transform_1, window_bounds = array<i64: 8, 128>}, {transform_indices = @transform_2, window_bounds = array<i64: 8, 128>}]} {
    %c0 = arith.constant 0 : index
    %c0_0 = arith.constant 0 : index
    %0 = vector.load %arg1[%c0, %c0_0] : memref<8x128xf32, #tpu.memory_space<vmem>>, vector<8x128xf32>
    %c0_1 = arith.constant 0 : index
    %c0_2 = arith.constant 0 : index
    %1 = vector.load %arg2[%c0_1, %c0_2] : memref<8x128xf32, #tpu.memory_space<vmem>>, vector<8x128xf32>
    %2 = arith.addf %0, %1 : vector<8x128xf32>
    %c0_3 = arith.constant 0 : index
    %c0_4 = arith.constant 0 : index
    %3 = vector.load %arg3[%c0_3, %c0_4] : memref<8x128xf32, #tpu.memory_space<vmem>>, vector<8x128xf32>
    tpu.vector_store %arg3[%c0_3, %c0_4], %2 {strides = array<i32>} : memref<8x128xf32, #tpu.memory_space<vmem>>, vector<8x128xf32>,
    return
  }
  func.func @transform_0(%arg0: i32) -> (i32, i32) {
    %c0_i32 = arith.constant 0 : i32
    %c0_i32_0 = arith.constant 0 : i32
    return %arg0, %c0_i32 : i32, i32
  }
  func.func @transform_1(%arg0: i32) -> (i32, i32) {
    %c0_i32 = arith.constant 0 : i32
    %c0_i32_0 = arith.constant 0 : i32
    %c0_i32_1 = arith.constant 0 : i32
    return %c0_i32, %c0_i32_0 : i32, i32
  }
  func.func @transform_2(%arg0: i32) -> (i32, i32) {
    %c0_i32 = arith.constant 0 : i32
    %c0_i32_0 = arith.constant 0 : i32
    return %arg0, %c0_i32 : i32, i32
  }
}

module attributes {stable_mosaic.version = 11 : i64} {
  func.func @_stack_kernel(%arg0: i32, %arg1: memref<8x32xf32, #tpu.memory_space<vmem>>, %arg2: memref<32x256xbf16, #tpu.memory_space<vmem>>, %arg3: memref<1x256xf32, #tpu.memory_space<vmem>>, %arg4: memref<1x256xf32, #tpu.memory_space<vmem>>, %arg5: memref<1x256xf32, #tpu.memory_space<vmem>>, %arg6: memref<256x256xbf16, #tpu.memory_space<vmem>>, %arg7: memref<1x256xf32, #tpu.memory_space<vmem>>, %arg8: memref<1x256xf32, #tpu.memory_space<vmem>>, %arg9: memref<1x256xf32, #tpu.memory_space<vmem>>, %arg10: memref<256x256xbf16, #tpu.memory_space<vmem>>, %arg11: memref<1x256xf32, #tpu.memory_space<vmem>>, %arg12: memref<1x256xf32, #tpu.memory_space<vmem>>, %arg13: memref<1x256xf32, #tpu.memory_space<vmem>>, %arg14: memref<256x256xbf16, #tpu.memory_space<vmem>>, %arg15: memref<1x256xf32, #tpu.memory_space<vmem>>, %arg16: memref<1x256xf32, #tpu.memory_space<vmem>>, %arg17: memref<1x256xf32, #tpu.memory_space<vmem>>, %arg18: memref<256x256xbf16, #tpu.memory_space<vmem>>, %arg19: memref<1x256xf32, #tpu.memory_space<vmem>>, %arg20: memref<1x256xf32, #tpu.memory_space<vmem>>, %arg21: memref<1x256xf32, #tpu.memory_space<vmem>>, %arg22: memref<256x1xbf16, #tpu.memory_space<vmem>>, %arg23: memref<1x1xf32, #tpu.memory_space<vmem>>, %arg24: memref<8x1xf32, #tpu.memory_space<vmem>>) attributes {dimension_semantics = [#tpu.dimension_semantics<parallel>], iteration_bounds = array<i64: 2>, scalar_prefetch = 0 : i64, scratch_operands = 0 : i64, tpu.core_type = #tpu.core_type<tc>, window_params = [{transform_indices = @transform_0, window_bounds = array<i64: 8, 32>}, {pipeline_mode = #tpu.pipeline_mode<synchronous>, transform_indices = @transform_1, window_bounds = array<i64: 32, 256>}, {pipeline_mode = #tpu.pipeline_mode<synchronous>, transform_indices = @transform_2, window_bounds = array<i64: 1, 256>}, {pipeline_mode = #tpu.pipeline_mode<synchronous>, transform_indices = @transform_3, window_bounds = array<i64: 1, 256>}, {pipeline_mode = #tpu.pipeline_mode<synchronous>, transform_indices = @transform_4, window_bounds = array<i64: 1, 256>}, {pipeline_mode = #tpu.pipeline_mode<synchronous>, transform_indices = @transform_5, window_bounds = array<i64: 256, 256>}, {pipeline_mode = #tpu.pipeline_mode<synchronous>, transform_indices = @transform_6, window_bounds = array<i64: 1, 256>}, {pipeline_mode = #tpu.pipeline_mode<synchronous>, transform_indices = @transform_7, window_bounds = array<i64: 1, 256>}, {pipeline_mode = #tpu.pipeline_mode<synchronous>, transform_indices = @transform_8, window_bounds = array<i64: 1, 256>}, {pipeline_mode = #tpu.pipeline_mode<synchronous>, transform_indices = @transform_9, window_bounds = array<i64: 256, 256>}, {pipeline_mode = #tpu.pipeline_mode<synchronous>, transform_indices = @transform_10, window_bounds = array<i64: 1, 256>}, {pipeline_mode = #tpu.pipeline_mode<synchronous>, transform_indices = @transform_11, window_bounds = array<i64: 1, 256>}, {pipeline_mode = #tpu.pipeline_mode<synchronous>, transform_indices = @transform_12, window_bounds = array<i64: 1, 256>}, {pipeline_mode = #tpu.pipeline_mode<synchronous>, transform_indices = @transform_13, window_bounds = array<i64: 256, 256>}, {pipeline_mode = #tpu.pipeline_mode<synchronous>, transform_indices = @transform_14, window_bounds = array<i64: 1, 256>}, {pipeline_mode = #tpu.pipeline_mode<synchronous>, transform_indices = @transform_15, window_bounds = array<i64: 1, 256>}, {pipeline_mode = #tpu.pipeline_mode<synchronous>, transform_indices = @transform_16, window_bounds = array<i64: 1, 256>}, {pipeline_mode = #tpu.pipeline_mode<synchronous>, transform_indices = @transform_17, window_bounds = array<i64: 256, 256>}, {pipeline_mode = #tpu.pipeline_mode<synchronous>, transform_indices = @transform_18, window_bounds = array<i64: 1, 256>}, {pipeline_mode = #tpu.pipeline_mode<synchronous>, transform_indices = @transform_19, window_bounds = array<i64: 1, 256>}, {pipeline_mode = #tpu.pipeline_mode<synchronous>, transform_indices = @transform_20, window_bounds = array<i64: 1, 256>}, {pipeline_mode = #tpu.pipeline_mode<synchronous>, transform_indices = @transform_21, window_bounds = array<i64: 256, 1>}, {pipeline_mode = #tpu.pipeline_mode<synchronous>, transform_indices = @transform_22, window_bounds = array<i64: 1, 1>}, {transform_indices = @transform_23, window_bounds = array<i64: 8, 1>}]} {
    %c0 = arith.constant 0 : index
    %c0_0 = arith.constant 0 : index
    %0 = vector.load %arg1[%c0, %c0_0] : memref<8x32xf32, #tpu.memory_space<vmem>>, vector<8x32xf32>
    %1 = arith.truncf %0 : vector<8x32xf32> to vector<8x32xbf16>
    %c0_1 = arith.constant 0 : index
    %c0_2 = arith.constant 0 : index
    %2 = vector.load %arg2[%c0_1, %c0_2] : memref<32x256xbf16, #tpu.memory_space<vmem>>, vector<32x256xbf16>
    %cst = arith.constant dense<0.000000e+00> : vector<8x256xf32>
    %3 = tpu.matmul %1, %2, %cst {dimension_numbers = #tpu.dot_dimension_numbers<[1], [0], [0], [1], [0, 0, 1, 1], [], []>} : vector<8x32xbf16>, vector<32x256xbf16>, vector<8x256xf32> -> vector<8x256xf32>
    %c0_3 = arith.constant 0 : index
    %c0_4 = arith.constant 0 : index
    %4 = vector.load %arg3[%c0_3, %c0_4] : memref<1x256xf32, #tpu.memory_space<vmem>>, vector<1x256xf32>
    %5 = vector.broadcast %4 : vector<1x256xf32> to vector<8x256xf32>
    %6 = arith.addf %3, %5 : vector<8x256xf32>
    %cst_5 = arith.constant 0.000000e+00 : f32
    %7 = vector.broadcast %cst_5 : f32 to vector<8x256xf32>
    %8 = arith.maximumf %6, %7 : vector<8x256xf32>
    %cst_6 = arith.constant dense<0.000000e+00> : vector<8xf32>
    %9 = vector.multi_reduction <add>, %8, %cst_6 [1] : vector<8x256xf32> to vector<8xf32>
    %10 = vector.shape_cast %9 : vector<8xf32> to vector<8x1xf32>
    %11 = arith.mulf %8, %8 : vector<8x256xf32>
    %cst_7 = arith.constant dense<0.000000e+00> : vector<8xf32>
    %12 = vector.multi_reduction <add>, %11, %cst_7 [1] : vector<8x256xf32> to vector<8xf32>
    %13 = vector.shape_cast %12 : vector<8xf32> to vector<8x1xf32>
    %cst_8 = arith.constant 1.562500e-02 : f32
    %14 = vector.broadcast %cst_8 : f32 to vector<8x1xf32>
    %15 = arith.mulf %10, %14 : vector<8x1xf32>
    %cst_9 = arith.constant 1.562500e-02 : f32
    %16 = vector.broadcast %cst_9 : f32 to vector<8x1xf32>
    %17 = arith.mulf %13, %16 : vector<8x1xf32>
    %18 = arith.mulf %15, %15 : vector<8x1xf32>
    %19 = arith.subf %17, %18 : vector<8x1xf32>
    %cst_10 = arith.constant 0.000000e+00 : f32
    %20 = vector.broadcast %cst_10 : f32 to vector<8x1xf32>
    %21 = arith.maximumf %19, %20 : vector<8x1xf32>
    %22 = vector.broadcast %15 : vector<8x1xf32> to vector<8x256xf32>
    %23 = arith.subf %8, %22 : vector<8x256xf32>
    %cst_11 = arith.constant 9.99999996E-13 : f32
    %24 = vector.broadcast %cst_11 : f32 to vector<8x1xf32>
    %25 = arith.addf %21, %24 : vector<8x1xf32>
    %26 = math.rsqrt %25 : vector<8x1xf32>
    %27 = vector.broadcast %26 : vector<8x1xf32> to vector<8x256xf32>
    %28 = arith.mulf %23, %27 : vector<8x256xf32>
    %c0_12 = arith.constant 0 : index
    %c0_13 = arith.constant 0 : index
    %29 = vector.load %arg4[%c0_12, %c0_13] : memref<1x256xf32, #tpu.memory_space<vmem>>, vector<1x256xf32>
    %30 = vector.broadcast %29 : vector<1x256xf32> to vector<8x256xf32>
    %31 = arith.mulf %30, %28 : vector<8x256xf32>
    %c0_14 = arith.constant 0 : index
    %c0_15 = arith.constant 0 : index
    %32 = vector.load %arg5[%c0_14, %c0_15] : memref<1x256xf32, #tpu.memory_space<vmem>>, vector<1x256xf32>
    %33 = vector.broadcast %32 : vector<1x256xf32> to vector<8x256xf32>
    %34 = arith.addf %31, %33 : vector<8x256xf32>
    %35 = arith.truncf %34 : vector<8x256xf32> to vector<8x256xbf16>
    %c0_16 = arith.constant 0 : index
    %c0_17 = arith.constant 0 : index
    %36 = vector.load %arg6[%c0_16, %c0_17] : memref<256x256xbf16, #tpu.memory_space<vmem>>, vector<256x256xbf16>
    %cst_18 = arith.constant dense<0.000000e+00> : vector<8x256xf32>
    %37 = tpu.matmul %35, %36, %cst_18 {dimension_numbers = #tpu.dot_dimension_numbers<[1], [0], [0], [1], [0, 0, 1, 1], [], []>} : vector<8x256xbf16>, vector<256x256xbf16>, vector<8x256xf32> -> vector<8x256xf32>
    %c0_19 = arith.constant 0 : index
    %c0_20 = arith.constant 0 : index
    %38 = vector.load %arg7[%c0_19, %c0_20] : memref<1x256xf32, #tpu.memory_space<vmem>>, vector<1x256xf32>
    %39 = vector.broadcast %38 : vector<1x256xf32> to vector<8x256xf32>
    %40 = arith.addf %37, %39 : vector<8x256xf32>
    %cst_21 = arith.constant 0.000000e+00 : f32
    %41 = vector.broadcast %cst_21 : f32 to vector<8x256xf32>
    %42 = arith.maximumf %40, %41 : vector<8x256xf32>
    %cst_22 = arith.constant dense<0.000000e+00> : vector<8xf32>
    %43 = vector.multi_reduction <add>, %42, %cst_22 [1] : vector<8x256xf32> to vector<8xf32>
    %44 = vector.shape_cast %43 : vector<8xf32> to vector<8x1xf32>
    %45 = arith.mulf %42, %42 : vector<8x256xf32>
    %cst_23 = arith.constant dense<0.000000e+00> : vector<8xf32>
    %46 = vector.multi_reduction <add>, %45, %cst_23 [1] : vector<8x256xf32> to vector<8xf32>
    %47 = vector.shape_cast %46 : vector<8xf32> to vector<8x1xf32>
    %cst_24 = arith.constant 1.562500e-02 : f32
    %48 = vector.broadcast %cst_24 : f32 to vector<8x1xf32>
    %49 = arith.mulf %44, %48 : vector<8x1xf32>
    %cst_25 = arith.constant 1.562500e-02 : f32
    %50 = vector.broadcast %cst_25 : f32 to vector<8x1xf32>
    %51 = arith.mulf %47, %50 : vector<8x1xf32>
    %52 = arith.mulf %49, %49 : vector<8x1xf32>
    %53 = arith.subf %51, %52 : vector<8x1xf32>
    %cst_26 = arith.constant 0.000000e+00 : f32
    %54 = vector.broadcast %cst_26 : f32 to vector<8x1xf32>
    %55 = arith.maximumf %53, %54 : vector<8x1xf32>
    %56 = vector.broadcast %49 : vector<8x1xf32> to vector<8x256xf32>
    %57 = arith.subf %42, %56 : vector<8x256xf32>
    %cst_27 = arith.constant 9.99999996E-13 : f32
    %58 = vector.broadcast %cst_27 : f32 to vector<8x1xf32>
    %59 = arith.addf %55, %58 : vector<8x1xf32>
    %60 = math.rsqrt %59 : vector<8x1xf32>
    %61 = vector.broadcast %60 : vector<8x1xf32> to vector<8x256xf32>
    %62 = arith.mulf %57, %61 : vector<8x256xf32>
    %c0_28 = arith.constant 0 : index
    %c0_29 = arith.constant 0 : index
    %63 = vector.load %arg8[%c0_28, %c0_29] : memref<1x256xf32, #tpu.memory_space<vmem>>, vector<1x256xf32>
    %64 = vector.broadcast %63 : vector<1x256xf32> to vector<8x256xf32>
    %65 = arith.mulf %64, %62 : vector<8x256xf32>
    %c0_30 = arith.constant 0 : index
    %c0_31 = arith.constant 0 : index
    %66 = vector.load %arg9[%c0_30, %c0_31] : memref<1x256xf32, #tpu.memory_space<vmem>>, vector<1x256xf32>
    %67 = vector.broadcast %66 : vector<1x256xf32> to vector<8x256xf32>
    %68 = arith.addf %65, %67 : vector<8x256xf32>
    %69 = arith.truncf %68 : vector<8x256xf32> to vector<8x256xbf16>
    %c0_32 = arith.constant 0 : index
    %c0_33 = arith.constant 0 : index
    %70 = vector.load %arg10[%c0_32, %c0_33] : memref<256x256xbf16, #tpu.memory_space<vmem>>, vector<256x256xbf16>
    %cst_34 = arith.constant dense<0.000000e+00> : vector<8x256xf32>
    %71 = tpu.matmul %69, %70, %cst_34 {dimension_numbers = #tpu.dot_dimension_numbers<[1], [0], [0], [1], [0, 0, 1, 1], [], []>} : vector<8x256xbf16>, vector<256x256xbf16>, vector<8x256xf32> -> vector<8x256xf32>
    %c0_35 = arith.constant 0 : index
    %c0_36 = arith.constant 0 : index
    %72 = vector.load %arg11[%c0_35, %c0_36] : memref<1x256xf32, #tpu.memory_space<vmem>>, vector<1x256xf32>
    %73 = vector.broadcast %72 : vector<1x256xf32> to vector<8x256xf32>
    %74 = arith.addf %71, %73 : vector<8x256xf32>
    %cst_37 = arith.constant 0.000000e+00 : f32
    %75 = vector.broadcast %cst_37 : f32 to vector<8x256xf32>
    %76 = arith.maximumf %74, %75 : vector<8x256xf32>
    %cst_38 = arith.constant dense<0.000000e+00> : vector<8xf32>
    %77 = vector.multi_reduction <add>, %76, %cst_38 [1] : vector<8x256xf32> to vector<8xf32>
    %78 = vector.shape_cast %77 : vector<8xf32> to vector<8x1xf32>
    %79 = arith.mulf %76, %76 : vector<8x256xf32>
    %cst_39 = arith.constant dense<0.000000e+00> : vector<8xf32>
    %80 = vector.multi_reduction <add>, %79, %cst_39 [1] : vector<8x256xf32> to vector<8xf32>
    %81 = vector.shape_cast %80 : vector<8xf32> to vector<8x1xf32>
    %cst_40 = arith.constant 1.562500e-02 : f32
    %82 = vector.broadcast %cst_40 : f32 to vector<8x1xf32>
    %83 = arith.mulf %78, %82 : vector<8x1xf32>
    %cst_41 = arith.constant 1.562500e-02 : f32
    %84 = vector.broadcast %cst_41 : f32 to vector<8x1xf32>
    %85 = arith.mulf %81, %84 : vector<8x1xf32>
    %86 = arith.mulf %83, %83 : vector<8x1xf32>
    %87 = arith.subf %85, %86 : vector<8x1xf32>
    %cst_42 = arith.constant 0.000000e+00 : f32
    %88 = vector.broadcast %cst_42 : f32 to vector<8x1xf32>
    %89 = arith.maximumf %87, %88 : vector<8x1xf32>
    %90 = vector.broadcast %83 : vector<8x1xf32> to vector<8x256xf32>
    %91 = arith.subf %76, %90 : vector<8x256xf32>
    %cst_43 = arith.constant 9.99999996E-13 : f32
    %92 = vector.broadcast %cst_43 : f32 to vector<8x1xf32>
    %93 = arith.addf %89, %92 : vector<8x1xf32>
    %94 = math.rsqrt %93 : vector<8x1xf32>
    %95 = vector.broadcast %94 : vector<8x1xf32> to vector<8x256xf32>
    %96 = arith.mulf %91, %95 : vector<8x256xf32>
    %c0_44 = arith.constant 0 : index
    %c0_45 = arith.constant 0 : index
    %97 = vector.load %arg12[%c0_44, %c0_45] : memref<1x256xf32, #tpu.memory_space<vmem>>, vector<1x256xf32>
    %98 = vector.broadcast %97 : vector<1x256xf32> to vector<8x256xf32>
    %99 = arith.mulf %98, %96 : vector<8x256xf32>
    %c0_46 = arith.constant 0 : index
    %c0_47 = arith.constant 0 : index
    %100 = vector.load %arg13[%c0_46, %c0_47] : memref<1x256xf32, #tpu.memory_space<vmem>>, vector<1x256xf32>
    %101 = vector.broadcast %100 : vector<1x256xf32> to vector<8x256xf32>
    %102 = arith.addf %99, %101 : vector<8x256xf32>
    %103 = arith.truncf %102 : vector<8x256xf32> to vector<8x256xbf16>
    %c0_48 = arith.constant 0 : index
    %c0_49 = arith.constant 0 : index
    %104 = vector.load %arg14[%c0_48, %c0_49] : memref<256x256xbf16, #tpu.memory_space<vmem>>, vector<256x256xbf16>
    %cst_50 = arith.constant dense<0.000000e+00> : vector<8x256xf32>
    %105 = tpu.matmul %103, %104, %cst_50 {dimension_numbers = #tpu.dot_dimension_numbers<[1], [0], [0], [1], [0, 0, 1, 1], [], []>} : vector<8x256xbf16>, vector<256x256xbf16>, vector<8x256xf32> -> vector<8x256xf32>
    %c0_51 = arith.constant 0 : index
    %c0_52 = arith.constant 0 : index
    %106 = vector.load %arg15[%c0_51, %c0_52] : memref<1x256xf32, #tpu.memory_space<vmem>>, vector<1x256xf32>
    %107 = vector.broadcast %106 : vector<1x256xf32> to vector<8x256xf32>
    %108 = arith.addf %105, %107 : vector<8x256xf32>
    %cst_53 = arith.constant 0.000000e+00 : f32
    %109 = vector.broadcast %cst_53 : f32 to vector<8x256xf32>
    %110 = arith.maximumf %108, %109 : vector<8x256xf32>
    %cst_54 = arith.constant dense<0.000000e+00> : vector<8xf32>
    %111 = vector.multi_reduction <add>, %110, %cst_54 [1] : vector<8x256xf32> to vector<8xf32>
    %112 = vector.shape_cast %111 : vector<8xf32> to vector<8x1xf32>
    %113 = arith.mulf %110, %110 : vector<8x256xf32>
    %cst_55 = arith.constant dense<0.000000e+00> : vector<8xf32>
    %114 = vector.multi_reduction <add>, %113, %cst_55 [1] : vector<8x256xf32> to vector<8xf32>
    %115 = vector.shape_cast %114 : vector<8xf32> to vector<8x1xf32>
    %cst_56 = arith.constant 1.562500e-02 : f32
    %116 = vector.broadcast %cst_56 : f32 to vector<8x1xf32>
    %117 = arith.mulf %112, %116 : vector<8x1xf32>
    %cst_57 = arith.constant 1.562500e-02 : f32
    %118 = vector.broadcast %cst_57 : f32 to vector<8x1xf32>
    %119 = arith.mulf %115, %118 : vector<8x1xf32>
    %120 = arith.mulf %117, %117 : vector<8x1xf32>
    %121 = arith.subf %119, %120 : vector<8x1xf32>
    %cst_58 = arith.constant 0.000000e+00 : f32
    %122 = vector.broadcast %cst_58 : f32 to vector<8x1xf32>
    %123 = arith.maximumf %121, %122 : vector<8x1xf32>
    %124 = vector.broadcast %117 : vector<8x1xf32> to vector<8x256xf32>
    %125 = arith.subf %110, %124 : vector<8x256xf32>
    %cst_59 = arith.constant 9.99999996E-13 : f32
    %126 = vector.broadcast %cst_59 : f32 to vector<8x1xf32>
    %127 = arith.addf %123, %126 : vector<8x1xf32>
    %128 = math.rsqrt %127 : vector<8x1xf32>
    %129 = vector.broadcast %128 : vector<8x1xf32> to vector<8x256xf32>
    %130 = arith.mulf %125, %129 : vector<8x256xf32>
    %c0_60 = arith.constant 0 : index
    %c0_61 = arith.constant 0 : index
    %131 = vector.load %arg16[%c0_60, %c0_61] : memref<1x256xf32, #tpu.memory_space<vmem>>, vector<1x256xf32>
    %132 = vector.broadcast %131 : vector<1x256xf32> to vector<8x256xf32>
    %133 = arith.mulf %132, %130 : vector<8x256xf32>
    %c0_62 = arith.constant 0 : index
    %c0_63 = arith.constant 0 : index
    %134 = vector.load %arg17[%c0_62, %c0_63] : memref<1x256xf32, #tpu.memory_space<vmem>>, vector<1x256xf32>
    %135 = vector.broadcast %134 : vector<1x256xf32> to vector<8x256xf32>
    %136 = arith.addf %133, %135 : vector<8x256xf32>
    %137 = arith.truncf %136 : vector<8x256xf32> to vector<8x256xbf16>
    %c0_64 = arith.constant 0 : index
    %c0_65 = arith.constant 0 : index
    %138 = vector.load %arg18[%c0_64, %c0_65] : memref<256x256xbf16, #tpu.memory_space<vmem>>, vector<256x256xbf16>
    %cst_66 = arith.constant dense<0.000000e+00> : vector<8x256xf32>
    %139 = tpu.matmul %137, %138, %cst_66 {dimension_numbers = #tpu.dot_dimension_numbers<[1], [0], [0], [1], [0, 0, 1, 1], [], []>} : vector<8x256xbf16>, vector<256x256xbf16>, vector<8x256xf32> -> vector<8x256xf32>
    %c0_67 = arith.constant 0 : index
    %c0_68 = arith.constant 0 : index
    %140 = vector.load %arg19[%c0_67, %c0_68] : memref<1x256xf32, #tpu.memory_space<vmem>>, vector<1x256xf32>
    %141 = vector.broadcast %140 : vector<1x256xf32> to vector<8x256xf32>
    %142 = arith.addf %139, %141 : vector<8x256xf32>
    %cst_69 = arith.constant 0.000000e+00 : f32
    %143 = vector.broadcast %cst_69 : f32 to vector<8x256xf32>
    %144 = arith.maximumf %142, %143 : vector<8x256xf32>
    %cst_70 = arith.constant dense<0.000000e+00> : vector<8xf32>
    %145 = vector.multi_reduction <add>, %144, %cst_70 [1] : vector<8x256xf32> to vector<8xf32>
    %146 = vector.shape_cast %145 : vector<8xf32> to vector<8x1xf32>
    %147 = arith.mulf %144, %144 : vector<8x256xf32>
    %cst_71 = arith.constant dense<0.000000e+00> : vector<8xf32>
    %148 = vector.multi_reduction <add>, %147, %cst_71 [1] : vector<8x256xf32> to vector<8xf32>
    %149 = vector.shape_cast %148 : vector<8xf32> to vector<8x1xf32>
    %cst_72 = arith.constant 1.562500e-02 : f32
    %150 = vector.broadcast %cst_72 : f32 to vector<8x1xf32>
    %151 = arith.mulf %146, %150 : vector<8x1xf32>
    %cst_73 = arith.constant 1.562500e-02 : f32
    %152 = vector.broadcast %cst_73 : f32 to vector<8x1xf32>
    %153 = arith.mulf %149, %152 : vector<8x1xf32>
    %154 = arith.mulf %151, %151 : vector<8x1xf32>
    %155 = arith.subf %153, %154 : vector<8x1xf32>
    %cst_74 = arith.constant 0.000000e+00 : f32
    %156 = vector.broadcast %cst_74 : f32 to vector<8x1xf32>
    %157 = arith.maximumf %155, %156 : vector<8x1xf32>
    %158 = vector.broadcast %151 : vector<8x1xf32> to vector<8x256xf32>
    %159 = arith.subf %144, %158 : vector<8x256xf32>
    %cst_75 = arith.constant 9.99999996E-13 : f32
    %160 = vector.broadcast %cst_75 : f32 to vector<8x1xf32>
    %161 = arith.addf %157, %160 : vector<8x1xf32>
    %162 = math.rsqrt %161 : vector<8x1xf32>
    %163 = vector.broadcast %162 : vector<8x1xf32> to vector<8x256xf32>
    %164 = arith.mulf %159, %163 : vector<8x256xf32>
    %c0_76 = arith.constant 0 : index
    %c0_77 = arith.constant 0 : index
    %165 = vector.load %arg20[%c0_76, %c0_77] : memref<1x256xf32, #tpu.memory_space<vmem>>, vector<1x256xf32>
    %166 = vector.broadcast %165 : vector<1x256xf32> to vector<8x256xf32>
    %167 = arith.mulf %166, %164 : vector<8x256xf32>
    %c0_78 = arith.constant 0 : index
    %c0_79 = arith.constant 0 : index
    %168 = vector.load %arg21[%c0_78, %c0_79] : memref<1x256xf32, #tpu.memory_space<vmem>>, vector<1x256xf32>
    %169 = vector.broadcast %168 : vector<1x256xf32> to vector<8x256xf32>
    %170 = arith.addf %167, %169 : vector<8x256xf32>
    %171 = arith.truncf %170 : vector<8x256xf32> to vector<8x256xbf16>
    %c0_80 = arith.constant 0 : index
    %c0_81 = arith.constant 0 : index
    %172 = vector.load %arg22[%c0_80, %c0_81] : memref<256x1xbf16, #tpu.memory_space<vmem>>, vector<256x1xbf16>
    %cst_82 = arith.constant dense<0.000000e+00> : vector<8x1xf32>
    %173 = tpu.matmul %171, %172, %cst_82 {dimension_numbers = #tpu.dot_dimension_numbers<[1], [0], [0], [1], [0, 0, 1, 1], [], []>} : vector<8x256xbf16>, vector<256x1xbf16>, vector<8x1xf32> -> vector<8x1xf32>
    %c0_83 = arith.constant 0 : index
    %c0_84 = arith.constant 0 : index
    %174 = vector.load %arg23[%c0_83, %c0_84] : memref<1x1xf32, #tpu.memory_space<vmem>>, vector<1x1xf32>
    %175 = vector.broadcast %174 : vector<1x1xf32> to vector<8x1xf32>
    %176 = arith.addf %173, %175 : vector<8x1xf32>
    %c0_85 = arith.constant 0 : index
    %c0_86 = arith.constant 0 : index
    %177 = vector.load %arg24[%c0_85, %c0_86] : memref<8x1xf32, #tpu.memory_space<vmem>>, vector<8x1xf32>
    tpu.vector_store %arg24[%c0_85, %c0_86], %176 {strides = array<i32>} : memref<8x1xf32, #tpu.memory_space<vmem>>, vector<8x1xf32>,
    return
  }
  func.func @transform_0(%arg0: i32) -> (i32, i32) {
    %c0_i32 = arith.constant 0 : i32
    %c0_i32_0 = arith.constant 0 : i32
    return %arg0, %c0_i32 : i32, i32
  }
  func.func @transform_1(%arg0: i32) -> (i32, i32) {
    %c0_i32 = arith.constant 0 : i32
    %c0_i32_0 = arith.constant 0 : i32
    %c0_i32_1 = arith.constant 0 : i32
    return %c0_i32, %c0_i32_0 : i32, i32
  }
  func.func @transform_2(%arg0: i32) -> (i32, i32) {
    %c0_i32 = arith.constant 0 : i32
    %c0_i32_0 = arith.constant 0 : i32
    %c0_i32_1 = arith.constant 0 : i32
    return %c0_i32, %c0_i32_0 : i32, i32
  }
  func.func @transform_3(%arg0: i32) -> (i32, i32) {
    %c0_i32 = arith.constant 0 : i32
    %c0_i32_0 = arith.constant 0 : i32
    %c0_i32_1 = arith.constant 0 : i32
    return %c0_i32, %c0_i32_0 : i32, i32
  }
  func.func @transform_4(%arg0: i32) -> (i32, i32) {
    %c0_i32 = arith.constant 0 : i32
    %c0_i32_0 = arith.constant 0 : i32
    %c0_i32_1 = arith.constant 0 : i32
    return %c0_i32, %c0_i32_0 : i32, i32
  }
  func.func @transform_5(%arg0: i32) -> (i32, i32) {
    %c0_i32 = arith.constant 0 : i32
    %c0_i32_0 = arith.constant 0 : i32
    %c0_i32_1 = arith.constant 0 : i32
    return %c0_i32, %c0_i32_0 : i32, i32
  }
  func.func @transform_6(%arg0: i32) -> (i32, i32) {
    %c0_i32 = arith.constant 0 : i32
    %c0_i32_0 = arith.constant 0 : i32
    %c0_i32_1 = arith.constant 0 : i32
    return %c0_i32, %c0_i32_0 : i32, i32
  }
  func.func @transform_7(%arg0: i32) -> (i32, i32) {
    %c0_i32 = arith.constant 0 : i32
    %c0_i32_0 = arith.constant 0 : i32
    %c0_i32_1 = arith.constant 0 : i32
    return %c0_i32, %c0_i32_0 : i32, i32
  }
  func.func @transform_8(%arg0: i32) -> (i32, i32) {
    %c0_i32 = arith.constant 0 : i32
    %c0_i32_0 = arith.constant 0 : i32
    %c0_i32_1 = arith.constant 0 : i32
    return %c0_i32, %c0_i32_0 : i32, i32
  }
  func.func @transform_9(%arg0: i32) -> (i32, i32) {
    %c0_i32 = arith.constant 0 : i32
    %c0_i32_0 = arith.constant 0 : i32
    %c0_i32_1 = arith.constant 0 : i32
    return %c0_i32, %c0_i32_0 : i32, i32
  }
  func.func @transform_10(%arg0: i32) -> (i32, i32) {
    %c0_i32 = arith.constant 0 : i32
    %c0_i32_0 = arith.constant 0 : i32
    %c0_i32_1 = arith.constant 0 : i32
    return %c0_i32, %c0_i32_0 : i32, i32
  }
  func.func @transform_11(%arg0: i32) -> (i32, i32) {
    %c0_i32 = arith.constant 0 : i32
    %c0_i32_0 = arith.constant 0 : i32
    %c0_i32_1 = arith.constant 0 : i32
    return %c0_i32, %c0_i32_0 : i32, i32
  }
  func.func @transform_12(%arg0: i32) -> (i32, i32) {
    %c0_i32 = arith.constant 0 : i32
    %c0_i32_0 = arith.constant 0 : i32
    %c0_i32_1 = arith.constant 0 : i32
    return %c0_i32, %c0_i32_0 : i32, i32
  }
  func.func @transform_13(%arg0: i32) -> (i32, i32) {
    %c0_i32 = arith.constant 0 : i32
    %c0_i32_0 = arith.constant 0 : i32
    %c0_i32_1 = arith.constant 0 : i32
    return %c0_i32, %c0_i32_0 : i32, i32
  }
  func.func @transform_14(%arg0: i32) -> (i32, i32) {
    %c0_i32 = arith.constant 0 : i32
    %c0_i32_0 = arith.constant 0 : i32
    %c0_i32_1 = arith.constant 0 : i32
    return %c0_i32, %c0_i32_0 : i32, i32
  }
  func.func @transform_15(%arg0: i32) -> (i32, i32) {
    %c0_i32 = arith.constant 0 : i32
    %c0_i32_0 = arith.constant 0 : i32
    %c0_i32_1 = arith.constant 0 : i32
    return %c0_i32, %c0_i32_0 : i32, i32
  }
  func.func @transform_16(%arg0: i32) -> (i32, i32) {
    %c0_i32 = arith.constant 0 : i32
    %c0_i32_0 = arith.constant 0 : i32
    %c0_i32_1 = arith.constant 0 : i32
    return %c0_i32, %c0_i32_0 : i32, i32
  }
  func.func @transform_17(%arg0: i32) -> (i32, i32) {
    %c0_i32 = arith.constant 0 : i32
    %c0_i32_0 = arith.constant 0 : i32
    %c0_i32_1 = arith.constant 0 : i32
    return %c0_i32, %c0_i32_0 : i32, i32
  }
  func.func @transform_18(%arg0: i32) -> (i32, i32) {
    %c0_i32 = arith.constant 0 : i32
    %c0_i32_0 = arith.constant 0 : i32
    %c0_i32_1 = arith.constant 0 : i32
    return %c0_i32, %c0_i32_0 : i32, i32
  }
  func.func @transform_19(%arg0: i32) -> (i32, i32) {
    %c0_i32 = arith.constant 0 : i32
    %c0_i32_0 = arith.constant 0 : i32
    %c0_i32_1 = arith.constant 0 : i32
    return %c0_i32, %c0_i32_0 : i32, i32
  }
  func.func @transform_20(%arg0: i32) -> (i32, i32) {
    %c0_i32 = arith.constant 0 : i32
    %c0_i32_0 = arith.constant 0 : i32
    %c0_i32_1 = arith.constant 0 : i32
    return %c0_i32, %c0_i32_0 : i32, i32
  }
  func.func @transform_21(%arg0: i32) -> (i32, i32) {
    %c0_i32 = arith.constant 0 : i32
    %c0_i32_0 = arith.constant 0 : i32
    %c0_i32_1 = arith.constant 0 : i32
    return %c0_i32, %c0_i32_0 : i32, i32
  }
  func.func @transform_22(%arg0: i32) -> (i32, i32) {
    %c0_i32 = arith.constant 0 : i32
    %c0_i32_0 = arith.constant 0 : i32
    %c0_i32_1 = arith.constant 0 : i32
    return %c0_i32, %c0_i32_0 : i32, i32
  }
  func.func @transform_23(%arg0: i32) -> (i32, i32) {
    %c0_i32 = arith.constant 0 : i32
    %c0_i32_0 = arith.constant 0 : i32
    return %arg0, %c0_i32 : i32, i32
  }
}

</mosaic_0001>

<bundles_post_ra>
// kernel: tpu_custom_call.1
= control target key start
LH: loop header
LB: loop body
LE: loop exit
PB: predicated region body
PF: predicated region fallthrough
CT: control target
= control target key end

     0   :  { %7 = vsyncpa [#allocation3], 0  ;;  %s633_s0 = inlined_call_operand.hbm [shape: f32[16,128], index: 0, kind: input, shape index: {}]   ;;  %s634_s1 = inlined_call_operand.hbm [shape: f32[8,128], index: 1, kind: input, shape index: {}]   ;;  %s635_s2 = inlined_call_operand.hbm [shape: f32[16,128], index: 2, kind: output, shape index: {}]  }
   0x1   :  { %9 = vsyncpa [#allocation3 + $0x1], 0 }
   0x2   :  { %10 = vsyncpa [#allocation6], 0 }
   0x3   :  { %11 = vsyncpa [#allocation4], 0 }
   0x4   :  { %13 = vsyncpa [#allocation4 + $0x1], 0  ;;  %s495_s9 = smov 0   ;;  %s497_s10 = smov 0  }
   0x5   :  { %s499_s11 = smov 0   ;;  %s501_s12 = smov 0  }
   0x6 LB: > { %s516_s13 = sadd.s32 4294967295, %s477_s12   ;;  %s276_s14 = sadd.s32 4294967294, %s477_s12   ;;  %s477_s12 = sphi %s501_s12, %s645_s12   ;;  %s473_s11 = sphi %s499_s11, %s644_s11   ;;  %s469_s10 = sphi %s497_s10, %s643_s10   ;;  %s465_s9 = sphi %s495_s9, %s642_s9  }
   0x7   : > { %p39_p0 = scmp.ne.s32.totalorder %s469_s10, %s465_s9  ;;  %p40_p1 = scmp.eq.s32.totalorder %s516_s13, 0 }
   0x8   : > { %p84_p2 = scmp.eq.s32.totalorder %s516_s13, 1  ;;  %p90_p3 = scmp.eq.s32.totalorder %s276_s14, 1 }
   0x9   : > { %p525_p4 = por %p40_p1, %p39_p0  ;;  %p277_p5 = scmp.ge.s32.totalorder %s477_s12, 1 }
   0xa   : > { %p530_p6 = por %p90_p3, %p39_p0  ;;  %p97_p7 = scmp.lt.s32.totalorder %s477_s12, 3 }
   0xb   : > { %s109_s19 = sshll.u32 %s634_s1, 4  ;;  %s479_s21 = smov [#allocation5]   ;;  %s110_s19 = int_to_ptr.hbm [resolvable:$true] %s109_s19 }
   0xc   : > { %p538_p8 = pnand %p277_p5, %p97_p7  ;;  %s111_s22 = sshll.u32 %s479_s21, 4  ;;  %s112_s22 = int_to_ptr.vmem [resolvable:$true] %s111_s22 }
   0xd   : > { %s548_s23 = sadd.s32 1, %s477_s12   ;;  %s26_s24 = sadd.s32 1, %s473_s11 }
   0xe   : > { %p298_p10 = pneg %p538_p8  ;;  %s23_s25 = ssub.s32 %s477_s12, %s548_s23 }
   0xf   : > { %p24_p12 = scmp.eq.s32.totalorder %s23_s25, 0  ;;  %p33_p13 = scmp.ne.s32.totalorder %s473_s11, %s469_s10 }
  0x10   : > { %p299_p11 = pnand %p298_p10, %p40_p1  ;;  %p34_p0 = scmp.eq.s32.totalorder %s477_s12, 0 }
  0x11   : > { %s557_s26 = scalar_select %p24_p12, %s473_s11, %s26_s24  }
  0x12   : > { %301 = dma.hbm_to_vmem [thread:$0]  (!%p299_p11), %s110_s19, 128, %s112_s22, [#allocation6]  }
  0x13   : > { %p561_p3 = por %p84_p2, %p33_p13  ;;  %p311_p5 = scmp.lt.s32.totalorder %s477_s12, 2 }
  0x14   : > { %s122_s28 = sand.u32 1, %s473_s11   ;;  %s281_s29 = sshll.u32 %s477_s12, 3 }
  0x15   : > { %p35_p7 = por %p34_p0, %p33_p13  ;;  %s280_s30 = sshll.u32 %s122_s28, 3 }
  0x16   : > { %s130_s5 = scalar_lea.hbm %s633_s0, %s281_s29  ;;  %s126_s7 = scalar_lea.vmem [#allocation2], %s280_s30 }
  0x17   : > { %s132_s6 = sshll.u32 %s130_s5, 4  ;;  %s134_s8 = sshll.u32 %s126_s7, 4  ;;  %s133_s6 = int_to_ptr.hbm [resolvable:$true] %s132_s6  ;;  %s135_s8 = int_to_ptr.vmem [resolvable:$true] %s134_s8 }
  0x18   : > { %p571_p10 = pnand %p311_p5, %p35_p7  ;;  %s123_s17 = scalar_lea.sflag [#allocation3], %s122_s28 }
  0x19   : > { %s377_s18 = sshra.s32 %s133_s6, 4  ;;  %s384_s24 = scalar_lea.hbm %s633_s0, 16  ;;  %s378_s18 = int_to_ptr.hbm [resolvable:$true] %s377_s18 }
  0x1a   : > { %s379_s19 = scalar_lea.hbm %s378_s18, 8  ;;  %p381_p11 = pneg %p571_p10 }
  0x1b   : > { %p380_p2 = scmp.ne.s32.totalorder %s378_s18, %s379_s19  ;;  %p385_p0 = scmp.lt.s32.totalorder %s378_s18, %s633_s0 }
  0x1c   : > { %p386_p5 = scmp.lt.s32.totalorder %s384_s24, %s379_s19 }
  0x1d   : > { %p382_p12 = pnand %p381_p11, %p380_p2 }
  0x1e   : > { %p387_p7 = por %p386_p5, %p385_p0 }
  0x1f   : > { %p383_p13 = pneg %p382_p12 }
  0x21   : > { %p388_p9 = pnand %p387_p7, %p383_p13 }
  0x23   : > { %391 = shalt.err (!%p388_p9)
}
  0x24   : > { %305 = dma.hbm_to_vmem [thread:$0]  (!%p571_p10), %s133_s6, 128, %s135_s8, %s123_s17  }
  0x25   : > { %143 = sbr.rel (%p538_p8) target bundleno = 60 (0x3c), region = 28  ;;  %s588_s28 = sand.u32 (!%p538_p8), 1, %s469_s10  }
  0x26   : > { %s283_s30 = sshll.u32 (!%p538_p8), %s588_s28, 3  ;;  %s146_s3 = scalar_lea.sflag (!%p538_p8), [#allocation3], %s588_s28 }
  0x27   : > { %s149_s4 = scalar_lea.vmem (!%p538_p8), [#allocation2], %s283_s30 }
  0x2a   : > { %452 = dma.done.wait (%p525_p4), %s146_s3, 128  }
  0x2b   : > { %454 = vsyncadd (%p525_p4), %s146_s3, 4294967168 }
  0x2c   : > { %456 = dma.done.wait (%p40_p1), [#allocation6], 128  }
  0x2d   : > { %458 = vsyncadd (%p40_p1), [#allocation6], 4294967168  ;;  %s287_s20 = sshll.u32 %s516_s13, 3  ;;  %s175_s8 = scalar_lea.vmem [#allocation7], %s283_s30  ;;  %v176_v0 = vld [vmem:[%s149_s4] sm:$0xff]  ;;  %v177_v1 = vld [vmem:[#allocation5] sm:$0xff] }
  0x2e   : > { %s191_s7 = scalar_lea.hbm %s635_s2, %s287_s20  ;;  %s193_s14 = sshll.u32 %s175_s8, 4  ;;  %v178_v2 = vadd.f32 %v177_v1, %v176_v0  ;;  %s194_s14 = int_to_ptr.vmem [resolvable:$true] %s193_s14 }
  0x2f   : > { %s195_s17 = sshll.u32 %s191_s7, 4  ;;  %s181_s15 = scalar_lea.sflag [#allocation4], %s588_s28  ;;  %s196_s17 = int_to_ptr.hbm [resolvable:$true] %s195_s17 }
  0x30   : > { %179 = vst [vmem:[%s175_s8] sm:$0xff] %v178_v2  ;;  %s421_s18 = sshra.s32 %s196_s17, 4  ;;  %s427_s22 = scalar_lea.hbm %s635_s2, 16  ;;  %s422_s18 = int_to_ptr.hbm [resolvable:$true] %s421_s18 }
  0x31   : > { %s423_s19 = scalar_lea.hbm %s422_s18, 8  ;;  %p428_p9 = scmp.lt.s32.totalorder %s422_s18, %s635_s2 }
  0x32   : > { %p424_p1 = scmp.ne.s32.totalorder %s422_s18, %s423_s19  ;;  %p429_p10 = scmp.lt.s32.totalorder %s427_s22, %s423_s19 }
  0x34   : > { %p425_p4 = pnand %p424_p1, %p561_p3  ;;  %p430_p2 = por %p429_p10, %p428_p9 }
  0x36   : > { %p426_p8 = pneg %p425_p4 }
  0x38   : > { %p431_p11 = pnand %p430_p2, %p426_p8 }
  0x3a   : > { %434 = shalt.err (!%p431_p11)
}
  0x3b   : > { %296 = dma.vmem_to_hbm [thread:$0]  (%p561_p3), %s194_s14, 128, %s196_s17, %s181_s15  }
  0x3c PF: > { %s207_s29 = sand.u32 1, %s465_s9   ;;  %p641_p12 = scmp.ge.s32.totalorder %s477_s12, 2 }
  0x3d   : > { %s208_s28 = scalar_lea.sflag [#allocation4], %s207_s29 }
  0x3e   : > { %p307_p13 = pnand %p641_p12, %p530_p6 }
  0x40   : > { %p308_p0 = pneg %p307_p13 }
  0x42   : > { %460 = dma.done.wait (%p308_p0), %s208_s28, 128  }
  0x43   : > { %462 = vsyncadd (%p308_p0), %s208_s28, 4294967168  ;;  %p16_p5 = scmp.ge.s32.totalorder %s548_s23, 4   ;;  %s642_s9 = smov %s469_s10 }
  0x44   : > { %s643_s10 = smov %s473_s11  ;;  %s644_s11 = smov %s557_s26 }
  0x45   : > { %s645_s12 = smov %s548_s23  ;;  %18 = sbr.rel (!%p16_p5) target bundleno = 6 (0x6), region = 77 }
  0x4a   :  { %214 = vsyncpa [#allocation3], 1 }
  0x4b   :  { %216 = vsyncpa [#allocation3 + $0x1], 1 }
  0x4c   :  { %217 = vsyncpa [#allocation6], 1 }
  0x4d   :  { %218 = vsyncpa [#allocation4], 1 }
  0x4e   :  { %220 = vsyncpa [#allocation4 + $0x1], 1 }

// kernel: tpu_custom_call.1
= control target key start
LH: loop header
LB: loop body
LE: loop exit
PB: predicated region body
PF: predicated region fallthrough
CT: control target
= control target key end

     0   :  { %s3686_s0 = inlined_call_operand.vmem [shape: f32[16,32], index: 0, kind: input, shape index: {}]   ;;  %s3687_s1 = inlined_call_operand.vmem [shape: bf16[32,256], index: 1, kind: input, shape index: {}]   ;;  %s3688_s2 = inlined_call_operand.vmem [shape: f32[1,256], index: 2, kind: input, shape index: {}]   ;;  %s3689_s3 = inlined_call_operand.vmem [shape: f32[1,256], index: 3, kind: input, shape index: {}]   ;;  %s3690_s4 = inlined_call_operand.vmem [shape: f32[1,256], index: 4, kind: input, shape index: {}]   ;;  %s3691_s5 = inlined_call_operand.hbm [shape: bf16[256,256], index: 5, kind: input, shape index: {}]   ;;  %s3692_s6 = inlined_call_operand.vmem [shape: f32[1,256], index: 6, kind: input, shape index: {}]   ;;  %s3693_s7 = inlined_call_operand.vmem [shape: f32[1,256], index: 7, kind: input, shape index: {}]   ;;  %s3694_s8 = inlined_call_operand.vmem [shape: f32[1,256], index: 8, kind: input, shape index: {}]   ;;  %s3695_s9 = inlined_call_operand.hbm [shape: bf16[256,256], index: 9, kind: input, shape index: {}]   ;;  %s3696_s10 = inlined_call_operand.vmem [shape: f32[1,256], index: 10, kind: input, shape index: {}]   ;;  %s3697_s11 = inlined_call_operand.vmem [shape: f32[1,256], index: 11, kind: input, shape index: {}]   ;;  %s3698_s12 = inlined_call_operand.vmem [shape: f32[1,256], index: 12, kind: input, shape index: {}]   ;;  %s3699_s13 = inlined_call_operand.hbm [shape: bf16[256,256], index: 13, kind: input, shape index: {}]   ;;  %s3700_s14 = inlined_call_operand.vmem [shape: f32[1,256], index: 14, kind: input, shape index: {}]   ;;  %s3701_s15 = inlined_call_operand.vmem [shape: f32[1,256], index: 15, kind: input, shape index: {}]   ;;  %s3702_s16 = inlined_call_operand.vmem [shape: f32[1,256], index: 16, kind: input, shape index: {}]   ;;  %s3703_s17 = inlined_call_operand.hbm [shape: bf16[256,256], index: 17, kind: input, shape index: {}]   ;;  %s3704_s18 = inlined_call_operand.vmem [shape: f32[1,256], index: 18, kind: input, shape index: {}]   ;;  %s3705_s19 = inlined_call_operand.vmem [shape: f32[1,256], index: 19, kind: input, shape index: {}]   ;;  %s3706_s20 = inlined_call_operand.vmem [shape: f32[1,256], index: 20, kind: input, shape index: {}]   ;;  %s3707_s21 = inlined_call_operand.vmem [shape: bf16[256,1], index: 21, kind: input, shape index: {}]   ;;  %s3708_s22 = inlined_call_operand.<no memory space> [shape: f32[1,1], index: 22, kind: input, shape index: {}]   ;;  %s3709_s23 = inlined_call_operand.vmem [shape: f32[16,1], index: 23, kind: output, shape index: {}]  }
   0x1   :  { %3712 = sst [smem:[#allocation14_spill]] %s3686_s0  ;;  %v28_v0 = vstv %s3708_s22 }
   0x2   :  { %3713 = sst [smem:[#allocation15_spill]] %s3687_s1  ;;  %29 = vst [vmem:[#allocation2] sm:$0x1] %v28_v0 }
   0x3   :  { %3714 = sst [smem:[#allocation16_spill]] %s3688_s2 }
   0x4   :  { %3715 = sst [smem:[#allocation17_spill]] %s3689_s3 }
   0x5   :  { %3716 = sst [smem:[#allocation18_spill]] %s3690_s4 }
   0x6   :  { %3717 = sst [smem:[#allocation19_spill]] %s3691_s5 }
   0x7   :  { %3718 = sst [smem:[#allocation20_spill]] %s3692_s6 }
   0x8   :  { %3719 = sst [smem:[#allocation21_spill]] %s3693_s7 }
   0x9   :  { %3720 = sst [smem:[#allocation22_spill]] %s3695_s9 }
   0xa   :  { %3721 = sst [smem:[#allocation23_spill]] %s3709_s23 }
   0xb   :  { %30 = vsyncpa [#allocation4], 0 }
   0xc   :  { %31 = vsyncpa [#allocation6], 0 }
   0xd   :  { %32 = vsyncpa [#allocation9], 0  ;;  %s3422_s24 = smov 0  }
   0xe LB: > { %3722 = sst [smem:[#allocation13_spill]] %s3291_s24  ;;  %s3428_s25 = sadd.s32 4294967295, %s3291_s24   ;;  %s3291_s24 = sphi %s3422_s24, %s38_s24  }
   0xf   : > { %p2334_p0 = scmp.ge.s32.totalorder %s3291_s24, 1  ;;  %p557_p1 = scmp.lt.s32.totalorder %s3291_s24, 3 }
  0x10   : > { %p3120_p2 = scmp.eq.s32.totalorder %s3428_s25, 0  ;;  %s3723_s9 = sld [smem:[#allocation22_spill]] }
  0x11   : > { %p3436_p3 = pnand %p2334_p0, %p557_p1  ;;  %s3725_s27 = sld [smem:[#allocation19_spill]] }
  0x12   : > { %s3293_s28 = smov [#allocation5]   ;;  %s3294_s0 = smov [#allocation3]  }
  0x13   : > { %p3107_p4 = pneg %p3436_p3  ;;  %s605_s29 = sshll.u32 %s3293_s28, 4  ;;  %s606_s29 = int_to_ptr.vmem [resolvable:$true] %s605_s29 }
  0x14   : > { %s582_s4 = sshll.u32 %s3294_s0, 4  ;;  %s626_s5 = sshll.u32 %s3699_s13, 4  ;;  %s583_s4 = int_to_ptr.vmem [resolvable:$true] %s582_s4  ;;  %s627_s5 = int_to_ptr.hbm [resolvable:$true] %s626_s5 }
  0x15   : > { %p3447_p5 = pnand %p3120_p2, %p3107_p4  ;;  %s3295_s2 = smov 128  }
  0x16   : > { %s603_s1 = sshll.u32 %s3723_s9, 4  ;;  %s3296_s6 = smov 8   ;;  %s604_s1 = int_to_ptr.hbm [resolvable:$true] %s603_s1 }
  0x17   : > { %s580_s7 = sshll.u32 %s3725_s27, 4  ;;  %s3297_s27 = smov [#allocation7]   ;;  %s581_s7 = int_to_ptr.hbm [resolvable:$true] %s580_s7 }
  0x18   : > { %3113 = dma.hbm_to_vmem [thread:$0]  (!%p3447_p5), %s604_s1, 4096, %s606_s29, [#allocation6], %s3295_s2, %s3295_s2, %s3296_s6  }
  0x19   : > { %3110 = dma.hbm_to_vmem [thread:$0]  (!%p3447_p5), %s581_s7, 4096, %s583_s4, [#allocation4], %s3295_s2, %s3295_s2, %s3296_s6  }
  0x1a   : > { %s628_s28 = sshll.u32 %s3297_s27, 4  ;;  %s649_s23 = sshll.u32 %s3703_s17, 4  ;;  %s629_s28 = int_to_ptr.vmem [resolvable:$true] %s628_s28  ;;  %s650_s23 = int_to_ptr.hbm [resolvable:$true] %s649_s23 }
  0x1b   : > { %3116 = dma.hbm_to_vmem [thread:$0]  (!%p3447_p5), %s627_s5, 4096, %s629_s28, [#allocation6], %s3295_s2, %s3295_s2, %s3296_s6  }
  0x1c   : > { %s3298_s0 = smov [#allocation8]   ;;  %689 = sbr.rel (%p3436_p3) target bundleno = 1665 (0x681), region = 112 }
  0x1d   : > { %s651_s30 = sshll.u32 %s3298_s0, 4  ;;  %s652_s30 = int_to_ptr.vmem [resolvable:$true] %s651_s30 }
  0x1e   : > { %3119 = dma.hbm_to_vmem [thread:$0]  (!%p3447_p5), %s650_s23, 4096, %s652_s30, [#allocation9], %s3295_s2, %s3295_s2, %s3296_s6  }
  0x21   : > { %3278 = dma.done.wait (%p3120_p2), [#allocation4], 4096  }
  0x22   : > { %3280 = vsyncadd (%p3120_p2), [#allocation4], 4294963200 }
  0x23   : > { %3282 = dma.done.wait (%p3120_p2), [#allocation6], 8192  }
  0x24   : > { %3284 = vsyncadd (%p3120_p2), [#allocation6], 4294959104 }
  0x25   : > { %3286 = dma.done.wait (%p3120_p2), [#allocation9], 4096  }
  0x26   : > { %3288 = vsyncadd (%p3120_p2), [#allocation9], 4294963200  ;;  %p767_p6 = scmp.lt.s32.totalorder %s3428_s25, 1  ;;  %s3727_s1 = sld [smem:[#allocation15_spill]]  ;;  %vm808_vm0 = vcmask 261120  }
  0x27   : > { %s3728_s5 = sld [smem:[#allocation14_spill]]  ;;  %v2423_v30 = vld [vmem:[#allocation3 + $0x70] sm:$0xf]  ;;  %v2962_v31 = vld [vmem:[#allocation3 + $0x74] sm:$0xf0] }
  0x28   : > { %s3737_s25 = smov (!%p767_p6, %s3428_s25), 1  ;;  %s3729_s22 = sld [smem:[#allocation16_spill]]  ;;  %v2487_v32 = vld [vmem:[#allocation3 + $0xf0] sm:$0xf]  ;;  %v2424_v33 = vor.u32 %v2962_v31, %v2423_v30  ;;  %v2978_v34 = vld [vmem:[#allocation3 + $0xf4] sm:$0xf0] }
  0x29   : > { %s2345_s9 = sshll.u32 %s3737_s25, 3  ;;  %v2961_v35 = vld [vmem:[#allocation3 + $0x74] sm:$0xf]  ;;  %v2425_v36 = vld [vmem:[#allocation3 + $0x78] sm:$0xf0]  ;;  %v2488_v37 = vor.u32 %v2978_v34, %v2487_v32  ;;  %s3730_s6 = sld [smem:[#allocation17_spill]] }
  0x2a   : > { %v2428_v38 = vor.u32 %v2961_v35, %v2425_v36  ;;  %v2977_v39 = vld [vmem:[#allocation3 + $0xf4] sm:$0xf]  ;;  %v2489_v40 = vld [vmem:[#allocation3 + $0xf8] sm:$0xf0]  ;;  %1084 = vmatpush.bf16.msra.mxu2 %v2424_v33  ;;  %v2415_v42 = vld [vmem:[#allocation3 + $0x60] sm:$0xf] }
  0x2b   : > { %v2492_v41 = vor.u32 %v2977_v39, %v2489_v40  ;;  %1097 = vmatpush.bf16.msra.mxu3 %v2488_v37  ;;  %v2960_v43 = vld [vmem:[#allocation3 + $0x64] sm:$0xf0]  ;;  %v2479_v44 = vld [vmem:[#allocation3 + $0xe0] sm:$0xf]  ;;  %v2959_v47 = vld [vmem:[#allocation3 + $0x64] sm:$0xf] }
  0x2c   : > { %v2357_v1 = vld [vmem:[%s3727_s1 + $0x10] sm:$0xf]  ;;  %v2946_v2 = vld [vmem:[%s3727_s1 + $0x14] sm:$0xf0]  ;;  %v2945_v3 = vld [vmem:[%s3727_s1 + $0x14] sm:$0xf]  ;;  %v2416_v45 = vor.u32 %v2960_v43, %v2415_v42 }
  0x2d   : > { %s770_s2 = scalar_lea.vmem %s3728_s5, %s2345_s9  ;;  %v2358_v4 = vor.u32 %v2946_v2, %v2357_v1  ;;  %v2359_v5 = vld [vmem:[%s3727_s1 + $0x18] sm:$0xf0]  ;;  %v2349_v6 = vld [vmem:[%s3727_s1] sm:$0xf]  ;;  %v2944_v7 = vld [vmem:[%s3727_s1 + $0x4] sm:$0xf0] }
  0x2e   : > { %v2362_v8 = vor.u32 %v2945_v3, %v2359_v5  ;;  %v2943_v9 = vld [vmem:[%s3727_s1 + $0x4] sm:$0xf]  ;;  %v2351_v10 = vld [vmem:[%s3727_s1 + $0x8] sm:$0xf0]  ;;  %v2350_v11 = vor.u32 %v2944_v7, %v2349_v6  ;;  %v782_v15 = vld [vmem:[%s3729_s22] sm:$0x3]  ;;  %1085 = vmatpush.bf16.msra.mxu2 %v2416_v45 }
  0x2f   : > { %818 = vmatpush.bf16.msra.mxu0 %v2358_v4  ;;  %v776_v12 = vld [vmem:[%s770_s2] sm:$0xff]  ;;  %v2354_v13 = vor.u32 %v2943_v9, %v2351_v10  ;;  %v784_v16 = vperm.slane %v782_v15, 0  ;;  %v785_v17 = vperm.slane %v782_v15, 1  ;;  %v2976_v46 = vld [vmem:[#allocation3 + $0xe4] sm:$0xf0]  ;;  %s3731_s0 = sld [smem:[#allocation18_spill]] }
  0x30   : > { %831 = vmatpush.bf16.msra.mxu1 %v2362_v8  ;;  %v777_v14 = vpack.c.bf16 %v776_v12, %v776_v12  ;;  %v2417_v48 = vld [vmem:[#allocation3 + $0x68] sm:$0xf0]  ;;  %v2480_v49 = vor.u32 %v2976_v46, %v2479_v44  ;;  %v2975_v51 = vld [vmem:[#allocation3 + $0xe4] sm:$0xf]  ;;  %v2407_v54 = vld [vmem:[#allocation3 + $0x50] sm:$0xf] }
  0x31   : > { %v2420_v50 = vor.u32 %v2959_v47, %v2417_v48  ;;  %v2481_v52 = vld [vmem:[#allocation3 + $0xe8] sm:$0xf0]  ;;  %v2958_v55 = vld [vmem:[#allocation3 + $0x54] sm:$0xf0]  ;;  %v2471_v56 = vld [vmem:[#allocation3 + $0xd0] sm:$0xf] }
  0x32   : > { %v2484_v53 = vor.u32 %v2975_v51, %v2481_v52  ;;  %1098 = vmatpush.bf16.msra.mxu3 %v2480_v49  ;;  %v2408_v57 = vor.u32 %v2958_v55, %v2407_v54  ;;  %v2974_v58 = vld [vmem:[#allocation3 + $0xd4] sm:$0xf0]  ;;  %v2957_v59 = vld [vmem:[#allocation3 + $0x54] sm:$0xf]  ;;  %v2409_v60 = vld [vmem:[#allocation3 + $0x58] sm:$0xf0] }
  0x33   : > { %819 = vmatpush.bf16.msra.mxu0 %v2350_v11  ;;  %v2472_v61 = vor.u32 %v2974_v58, %v2471_v56  ;;  %v2412_v62 = vor.u32 %v2957_v59, %v2409_v60  ;;  %v2973_v63 = vld [vmem:[#allocation3 + $0xd4] sm:$0xf]  ;;  %v2473_v0 = vld [vmem:[#allocation3 + $0xd8] sm:$0xf0]  ;;  %v2399_v2 = vld [vmem:[#allocation3 + $0x40] sm:$0xf] }
  0x34   : > { %832 = vmatpush.bf16.msra.mxu1 %v2354_v13  ;;  %1086 = vmatpush.bf16.msra.mxu2 %v2408_v57  ;;  %v2476_v1 = vor.u32 %v2973_v63, %v2473_v0  ;;  %v2956_v3 = vld [vmem:[#allocation3 + $0x44] sm:$0xf0]  ;;  %v2463_v4 = vld [vmem:[#allocation3 + $0xc0] sm:$0xf]  ;;  %v2955_v7 = vld [vmem:[#allocation3 + $0x44] sm:$0xf] }
  0x35   : > { %v2400_v5 = vor.u32 %v2956_v3, %v2399_v2  ;;  %v2972_v6 = vld [vmem:[#allocation3 + $0xc4] sm:$0xf0]  ;;  %v2401_v8 = vld [vmem:[#allocation3 + $0x48] sm:$0xf0]  ;;  %v2971_v11 = vld [vmem:[#allocation3 + $0xc4] sm:$0xf] }
  0x36   : > { %2363 = vmatmul.msk.bf16.vlgmr.msra.gmra.mxu0 %vm808_vm0, %v777_v14  ;;  %1099 = vmatpush.bf16.msra.mxu3 %v2472_v61  ;;  %v2464_v9 = vor.u32 %v2972_v6, %v2463_v4  ;;  %v2404_v10 = vor.u32 %v2955_v7, %v2401_v8  ;;  %v2465_v12 = vld [vmem:[#allocation3 + $0xc8] sm:$0xf0]  ;;  %v2954_v15 = vld [vmem:[#allocation3 + $0x34] sm:$0xf0]  ;;  %v2447_v30 = vld [vmem:[#allocation3 + $0xa0] sm:$0xf] }
  0x37   : > { %2364 = vmatmul.msk.bf16.vlgmr.msra.gmra.mxu1 %vm808_vm0, %v777_v14  ;;  %1110 = vmatpush.bf16.msrb.mxu0 %v2428_v38  ;;  %v2468_v13 = vor.u32 %v2971_v11, %v2465_v12  ;;  %v2391_v14 = vld [vmem:[#allocation3 + $0x30] sm:$0xf]  ;;  %v2968_v32 = vld [vmem:[#allocation3 + $0xa4] sm:$0xf0]  ;;  %v2951_v33 = vld [vmem:[#allocation3 + $0x24] sm:$0xf] }
  0x38   : > { %1123 = vmatpush.bf16.msrb.mxu1 %v2492_v41  ;;  %1087 = vmatpush.bf16.msra.mxu2 %v2400_v5  ;;  %v2385_v34 = vld [vmem:[#allocation3 + $0x28] sm:$0xf0]  ;;  %v2448_v35 = vor.u32 %v2968_v32, %v2447_v30  ;;  %v2967_v37 = vld [vmem:[#allocation3 + $0xa4] sm:$0xf]  ;;  %v2375_v39 = vld [vmem:[#allocation3 + $0x10] sm:$0xf] }
  0x39   : > { %v2388_v36 = vor.u32 %v2951_v33, %v2385_v34  ;;  %v2449_v38 = vld [vmem:[#allocation3 + $0xa8] sm:$0xf0]  ;;  %v2950_v42 = vld [vmem:[#allocation3 + $0x14] sm:$0xf0]  ;;  %v2439_v43 = vld [vmem:[#allocation3 + $0x90] sm:$0xf] }
  0x3a   : > { %1100 = vmatpush.bf16.msra.mxu3 %v2464_v9  ;;  %v2452_v41 = vor.u32 %v2967_v37, %v2449_v38  ;;  %v2966_v44 = vld [vmem:[#allocation3 + $0x94] sm:$0xf0]  ;;  %v2376_v45 = vor.u32 %v2950_v42, %v2375_v39  ;;  %v2949_v47 = vld [vmem:[#allocation3 + $0x14] sm:$0xf]  ;;  %v2377_v48 = vld [vmem:[#allocation3 + $0x18] sm:$0xf0] }
  0x3b   : > { %1111 = vmatpush.bf16.msrb.mxu0 %v2420_v50  ;;  %v2440_v46 = vor.u32 %v2966_v44, %v2439_v43  ;;  %v2380_v49 = vor.u32 %v2949_v47, %v2377_v48  ;;  %v2965_v50 = vld [vmem:[#allocation3 + $0x94] sm:$0xf]  ;;  %v2441_v51 = vld [vmem:[#allocation3 + $0x98] sm:$0xf0]  ;;  %v2367_v52 = vld [vmem:[#allocation3] sm:$0xf] }
  0x3c   : > { %1124 = vmatpush.bf16.msrb.mxu1 %v2484_v53  ;;  %v2444_v53 = vor.u32 %v2965_v50, %v2441_v51  ;;  %v2948_v54 = vld [vmem:[#allocation3 + $0x4] sm:$0xf0]  ;;  %v2431_v55 = vld [vmem:[#allocation3 + $0x80] sm:$0xf]  ;;  %v2947_v58 = vld [vmem:[#allocation3 + $0x4] sm:$0xf] }
  0x3d   : > { %v2964_v56 = vld [vmem:[#allocation3 + $0x84] sm:$0xf0]  ;;  %v2368_v57 = vor.u32 %v2948_v54, %v2367_v52  ;;  %v2369_v59 = vld [vmem:[#allocation3 + $0x8] sm:$0xf0]  ;;  %v2963_v60 = vld [vmem:[#allocation3 + $0x84] sm:$0xf] }
  0x3e   : > { %v2372_v63 = vor.u32 %v2947_v58, %v2369_v59  ;;  %v2433_v0 = vld [vmem:[#allocation3 + $0x88] sm:$0xf0]  ;;  %s3732_s24 = sld [smem:[#allocation20_spill]]  ;;  %v2551_v52 = vld [vmem:[#allocation5 + $0x70] sm:$0xf]  ;;  %vm2236_vm0 = vcmask 7168  }
  0x3f   : > { %1112 = vmatpush.bf16.msrb.mxu0 %v2412_v62  ;;  %v2432_v62 = vor.u32 %v2964_v56, %v2431_v55  ;;  %v2615_v54 = vld [vmem:[#allocation5 + $0xf0] sm:$0xf]  ;;  %v3010_v56 = vld [vmem:[#allocation5 + $0xf4] sm:$0xf0]  ;;  %v2553_v58 = vld [vmem:[#allocation5 + $0x78] sm:$0xf0] }
  0x40   : > { %1125 = vmatpush.bf16.msrb.mxu1 %v2476_v1  ;;  %v2436_v1 = vor.u32 %v2963_v60, %v2433_v0  ;;  %v2616_v59 = vor.u32 %v3010_v56, %v2615_v54  ;;  %v2543_v0 = vld [vmem:[#allocation5 + $0x60] sm:$0xf]  ;;  %v3000_v54 = vld [vmem:[#allocation5 + $0xa4] sm:$0xf0]  ;;  %v2513_v56 = vld [vmem:[#allocation5 + $0x28] sm:$0xf0] }
  0x41   : > { %s3733_s29 = sld [smem:[#allocation21_spill]] }
  0x42   : > { %s3734_s30 = sld [smem:[#allocation23_spill]] }
  0x43   : > { %1113 = vmatpush.bf16.msrb.mxu0 %v2404_v10 }
  0x44   : > { %1126 = vmatpush.bf16.msrb.mxu1 %v2468_v13  ;;  %v868_v13 = vld [vmem:[%s3730_s6] sm:$0x3] }
  0x48   : > { %s774_s23 = scalar_lea.vmem %s3734_s30, %s2345_s9 }
  0xb3   : > { %v821_v18 = vpop.f32.mrf.mxu0 }
  0xb4   : > { %v822_v19 = vadd.f32 %v821_v18, %v784_v16  ;;  %v834_v20 = vpop.f32.mrf.mxu1  ;;  %v2455_v16 = vld [vmem:[#allocation3 + $0xb0] sm:$0xf]  ;;  %v2970_v18 = vld [vmem:[#allocation3 + $0xb4] sm:$0xf0] }
  0xb5   : > { %v835_v21 = vadd.f32 %v834_v20, %v785_v17  ;;  %v2392_v17 = vor.u32 %v2954_v15, %v2391_v14  ;;  %v2393_v20 = vld [vmem:[#allocation3 + $0x38] sm:$0xf0] }
  0xb6   : > { %v3516_v22 = vmax.f32 %v822_v19, 0.0  ;;  %v2953_v19 = vld [vmem:[#allocation3 + $0x34] sm:$0xf]  ;;  %v876_v15 = vld [vmem:[%s3731_s0] sm:$0x3] }
  0xb7   : > { %v3518_v23 = vmax.f32 %v835_v21, 0.0  ;;  %v2456_v21 = vor.u32 %v2970_v18, %v2455_v16  ;;  %1088 = vmatpush.bf16.msra.mxu2 %v2392_v17  ;;  %v870_v18 = vperm.slane %v868_v13, 0 }
  0xb8   : > { %v843_v27 = vmul.f32 %v3516_v22, %v3516_v22 }
  0xb9   : > { %v840_v24 = vadd.f32 %v3518_v23, %v3516_v22  ;;  %v844_v28 = vmul.f32 %v3518_v23, %v3518_v23  ;;  %1101 = vmatpush.bf16.msra.mxu3 %v2456_v21 }
  0xbb   : > { %841 = vadd.xlane.f32.xlu0 %v840_v24  ;;  %v823_v25 = vpop.f32.mrf.mxu0  ;;  %v845_v29 = vadd.f32 %v844_v28, %v843_v27  ;;  %v2396_v24 = vor.u32 %v2953_v19, %v2393_v20  ;;  %v2383_v28 = vld [vmem:[#allocation3 + $0x20] sm:$0xf]  ;;  %v871_v19 = vperm.slane %v868_v13, 1  ;;  %v2990_v13 = vld [vmem:[#allocation5 + $0x54] sm:$0xf0] }
  0xbc   : > { %v836_v26 = vpop.f32.mrf.mxu1  ;;  %v2969_v25 = vld [vmem:[#allocation3 + $0xb4] sm:$0xf] }
  0xbd   : > { %v2457_v26 = vld [vmem:[#allocation3 + $0xb8] sm:$0xf0]  ;;  %1114 = vmatpush.bf16.msrb.mxu0 %v2396_v24  ;;  %1102 = vmatpush.bf16.msra.mxu3 %v2448_v35  ;;  %v878_v24 = vperm.slane %v876_v15, 0 }
  0xbe   : > { %v2460_v27 = vor.u32 %v2969_v25, %v2457_v26  ;;  %v879_v26 = vperm.slane %v876_v15, 1 }
  0xc0   : > { %1127 = vmatpush.bf16.msrb.mxu1 %v2460_v27 }
  0xc1   : > { %1115 = vmatpush.bf16.msrb.mxu0 %v2388_v36  ;;  %1103 = vmatpush.bf16.msra.mxu3 %v2440_v46 }
  0xc3   : > { %846 = vadd.xlane.f32.xlu0 %v845_v29  ;;  %v2952_v29 = vld [vmem:[#allocation3 + $0x24] sm:$0xf0] }
  0xc4   : > { %v2384_v31 = vor.u32 %v2952_v29, %v2383_v28  ;;  %1128 = vmatpush.bf16.msrb.mxu1 %v2452_v41 }
  0xc5   : > { %1116 = vmatpush.bf16.msrb.mxu0 %v2380_v49  ;;  %1104 = vmatpush.bf16.msra.mxu3 %v2432_v62  ;;  %v2617_v62 = vld [vmem:[#allocation5 + $0xf8] sm:$0xf0] }
  0xc6   : > { %1089 = vmatpush.bf16.msra.mxu2 %v2384_v31 }
  0xc8   : > { %1129 = vmatpush.bf16.msrb.mxu1 %v2444_v53  ;;  %v2994_v53 = vld [vmem:[#allocation5 + $0x74] sm:$0xf0] }
  0xc9   : > { %1117 = vmatpush.bf16.msrb.mxu0 %v2372_v63  ;;  %v2552_v55 = vor.u32 %v2994_v53, %v2551_v52  ;;  %1395 = vmatpush.bf16.msrb.mxu3 %v2616_v59  ;;  %v2575_v52 = vld [vmem:[#allocation5 + $0xa0] sm:$0xf] }
  0xca   : > { %1090 = vmatpush.bf16.msra.mxu2 %v2376_v45 }
  0xcc   : > { %1130 = vmatpush.bf16.msrb.mxu1 %v2436_v1  ;;  %v2992_v1 = vld [vmem:[#allocation5 + $0x64] sm:$0xf0] }
  0xce   : > { %1091 = vmatpush.bf16.msra.mxu2 %v2368_v57  ;;  %v2993_v57 = vld [vmem:[#allocation5 + $0x74] sm:$0xf] }
  0xcf   : > { %v2556_v60 = vor.u32 %v2993_v57, %v2553_v58  ;;  %v2576_v58 = vor.u32 %v3000_v54, %v2575_v52 }
  0xd1   : > { %1408 = vmatpush.bf16.msra.mxu0 %v2556_v60  ;;  %v2999_v60 = vld [vmem:[#allocation5 + $0xa4] sm:$0xf] }
  0xd2   : > { %1382 = vmatpush.bf16.msrb.mxu2 %v2552_v55  ;;  %v2983_v55 = vld [vmem:[#allocation5 + $0x24] sm:$0xf] }
  0xd3   : > { %v2516_v59 = vor.u32 %v2983_v55, %v2513_v56 }
 0x12e   : > { %v842_v40 = vpop.xlane.xlu0 %841 }
 0x12f   : > { %v848_v61 = vmul.f32 0.015625, %v842_v40 }
 0x131   : > { %v850_v3 = vmul.f32 %v848_v61, %v848_v61  ;;  %v853_v16 = vsub.f32 %v3516_v22, %v848_v61  ;;  %v854_v17 = vsub.f32 %v3518_v23, %v848_v61  ;;  %v918_v22 = vld [vmem:[%s3732_s24] sm:$0x3]  ;;  %v3009_v61 = vld [vmem:[#allocation5 + $0xf4] sm:$0xf] }
 0x132   : > { %v921_v23 = vperm.slane %v918_v22, 1  ;;  %v920_v36 = vperm.slane %v918_v22, 0  ;;  %v2620_v63 = vor.u32 %v3009_v61, %v2617_v62  ;;  %v2577_v61 = vld [vmem:[#allocation5 + $0xa8] sm:$0xf0]  ;;  %v2503_v62 = vld [vmem:[#allocation5 + $0x10] sm:$0xf] }
 0x134   : > { %1421 = vmatpush.bf16.msra.mxu1 %v2620_v63 }
 0x136   : > { %v847_v2 = vpop.xlane.xlu0 %846 }
 0x137   : > { %v849_v4 = vmul.f32 0.015625, %v847_v2  ;;  %v2607_v2 = vld [vmem:[#allocation5 + $0xe0] sm:$0xf] }
 0x139   : > { %v851_v5 = vsub.f32 %v849_v4, %v850_v3  ;;  %v2544_v3 = vor.u32 %v2992_v1, %v2543_v0  ;;  %v3008_v4 = vld [vmem:[#allocation5 + $0xe4] sm:$0xf0]  ;;  %v2580_v0 = vor.u32 %v2999_v60, %v2577_v61  ;;  %v2982_v1 = vld [vmem:[#allocation5 + $0x14] sm:$0xf0] }
 0x13b   : > { %v852_v6 = vmax.f32 %v851_v5, 0.0  ;;  %v2991_v5 = vld [vmem:[#allocation5 + $0x64] sm:$0xf]  ;;  %1383 = vmatpush.bf16.msrb.mxu2 %v2544_v3  ;;  %v2504_v3 = vor.u32 %v2982_v1, %v2503_v62 }
 0x13d   : > { %v855_v7 = vadd.f32 1e-12, %v852_v6  ;;  %v2545_v6 = vld [vmem:[#allocation5 + $0x68] sm:$0xf0] }
 0x13f   : > { %3143 = vrsqrt.f32 %v855_v7  ;;  %vm862_vm2 = vweird.f32 %v855_v7 }
 0x145   : > { %v3144_v8 = vpop.eup %3143 }
 0x146   : > { %v857_v9 = vmul.f32 %v3144_v8, %v855_v7  ;;  %vm863_vm1 = vweird.f32 %v3144_v8  ;;  %v2608_v7 = vor.u32 %v3008_v4, %v2607_v2  ;;  %v2567_v2 = vld [vmem:[#allocation5 + $0x90] sm:$0xf]  ;;  %v2998_v4 = vld [vmem:[#allocation5 + $0x94] sm:$0xf0] }
 0x147   : > { %vm864_vm3 = vmor %vm862_vm2, %vm863_vm1 }
 0x148   : > { %v858_v10 = vmul.f32 %v3144_v8, %v857_v9  ;;  %v3007_v9 = vld [vmem:[#allocation5 + $0xe4] sm:$0xf]  ;;  %1396 = vmatpush.bf16.msrb.mxu3 %v2608_v7  ;;  %v2568_v7 = vor.u32 %v2998_v4, %v2567_v2 }
 0x14a   : > { %v859_v11 = vmul.f32 0.5, %v858_v10  ;;  %v2609_v10 = vld [vmem:[#allocation5 + $0xe8] sm:$0xf0] }
 0x14c   : > { %v860_v12 = vsub.f32 1.5, %v859_v11  ;;  %v2612_v11 = vor.u32 %v3007_v9, %v2609_v10  ;;  %v2569_v9 = vld [vmem:[#allocation5 + $0x98] sm:$0xf0]  ;;  %v2495_v10 = vld [vmem:[#allocation5] sm:$0xf] }
 0x14e   : > { %v861_v14 = vmul.f32 %v3144_v8, %v860_v12  ;;  %v2535_v12 = vld [vmem:[#allocation5 + $0x50] sm:$0xf]  ;;  %1422 = vmatpush.bf16.msra.mxu1 %v2612_v11 }
 0x14f   : > { %v2536_v15 = vor.u32 %v2990_v13, %v2535_v12  ;;  %v2980_v13 = vld [vmem:[#allocation5 + $0x4] sm:$0xf0] }
 0x150   : > { %v865_v20 = vsel %vm864_vm3, %v3144_v8, %v861_v14  ;;  %v2548_v8 = vor.u32 %v2991_v5, %v2545_v6  ;;  %v2599_v14 = vld [vmem:[#allocation5 + $0xd0] sm:$0xf]  ;;  %v2981_v5 = vld [vmem:[#allocation5 + $0x14] sm:$0xf]  ;;  %v2505_v6 = vld [vmem:[#allocation5 + $0x18] sm:$0xf0] }
 0x151   : > { %v866_v21 = vmul.f32 %v865_v20, %v853_v16  ;;  %v867_v25 = vmul.f32 %v865_v20, %v854_v17  ;;  %v3006_v16 = vld [vmem:[#allocation5 + $0xd4] sm:$0xf0]  ;;  %v2989_v17 = vld [vmem:[#allocation5 + $0x54] sm:$0xf]  ;;  %1384 = vmatpush.bf16.msrb.mxu2 %v2536_v15  ;;  %v2508_v11 = vor.u32 %v2981_v5, %v2505_v6  ;;  %v2996_v15 = vld [vmem:[#allocation5 + $0x84] sm:$0xf0] }
 0x152   : > { %1409 = vmatpush.bf16.msra.mxu0 %v2548_v8  ;;  %v2997_v8 = vld [vmem:[#allocation5 + $0x94] sm:$0xf] }
 0x153   : > { %v874_v27 = vmul.f32 %v870_v18, %v866_v21  ;;  %v875_v28 = vmul.f32 %v871_v19, %v867_v25  ;;  %v2537_v18 = vld [vmem:[#allocation5 + $0x58] sm:$0xf0]  ;;  %v2600_v19 = vor.u32 %v3006_v16, %v2599_v14  ;;  %v3005_v21 = vld [vmem:[#allocation5 + $0xd4] sm:$0xf]  ;;  %v2572_v12 = vor.u32 %v2997_v8, %v2569_v9  ;;  %v2559_v14 = vld [vmem:[#allocation5 + $0x80] sm:$0xf] }
 0x154   : > { %v2540_v20 = vor.u32 %v2989_v17, %v2537_v18  ;;  %v2496_v16 = vor.u32 %v2980_v13, %v2495_v10  ;;  %v2979_v17 = vld [vmem:[#allocation5 + $0x4] sm:$0xf]  ;;  %v2497_v18 = vld [vmem:[#allocation5 + $0x8] sm:$0xf0]  ;;  %v2679_v10 = vld [vmem:[#allocation7 + $0x70] sm:$0xf] }
 0x155   : > { %v882_v29 = vadd.f32 %v878_v24, %v874_v27  ;;  %v883_v30 = vadd.f32 %v879_v26, %v875_v28  ;;  %v2601_v24 = vld [vmem:[#allocation5 + $0xd8] sm:$0xf0]  ;;  %1397 = vmatpush.bf16.msrb.mxu3 %v2600_v19  ;;  %v2527_v26 = vld [vmem:[#allocation5 + $0x40] sm:$0xf]  ;;  %v2988_v27 = vld [vmem:[#allocation5 + $0x44] sm:$0xf0] }
 0x156   : > { %v2604_v25 = vor.u32 %v3005_v21, %v2601_v24  ;;  %1410 = vmatpush.bf16.msra.mxu0 %v2540_v20  ;;  %v2591_v28 = vld [vmem:[#allocation5 + $0xc0] sm:$0xf]  ;;  %v2995_v19 = vld [vmem:[#allocation5 + $0x84] sm:$0xf]  ;;  %v2560_v20 = vor.u32 %v2996_v15, %v2559_v14  ;;  %v2500_v21 = vor.u32 %v2979_v17, %v2497_v18  ;;  %v2561_v24 = vld [vmem:[#allocation5 + $0x88] sm:$0xf0] }
 0x157   : > { %v884_v31 = vpack.c.bf16 %v882_v29, %v882_v29  ;;  %v885_v32 = vpack.c.bf16 %v883_v30, %v883_v30  ;;  %v2528_v29 = vor.u32 %v2988_v27, %v2527_v26  ;;  %v3004_v30 = vld [vmem:[#allocation5 + $0xc4] sm:$0xf0]  ;;  %v3042_v14 = vld [vmem:[#allocation7 + $0xf4] sm:$0xf0]  ;;  %v3025_v15 = vld [vmem:[#allocation7 + $0x74] sm:$0xf] }
 0x158   : > { %1423 = vmatpush.bf16.msra.mxu1 %v2604_v25  ;;  %v2592_v22 = vor.u32 %v3004_v30, %v2591_v28  ;;  %v2564_v25 = vor.u32 %v2995_v19, %v2561_v24  ;;  %v3041_v19 = vld [vmem:[#allocation7 + $0xf4] sm:$0xf]  ;;  %v2671_v24 = vld [vmem:[#allocation7 + $0x60] sm:$0xf] }
 0x159   : > { %1092 = vmatmul.bf16.vlgmr.msra.gmra.mxu2 %v884_v31  ;;  %1105 = vmatmul.bf16.vlgmr.msra.gmra.mxu3 %v885_v32 }
 0x15a   : > { %1118 = vmatmul.bf16.vlgmr.msrb.gmra.mxu0 %v884_v31  ;;  %1131 = vmatmul.bf16.vlgmr.msrb.gmra.mxu1 %v885_v32  ;;  %v2987_v31 = vld [vmem:[#allocation5 + $0x44] sm:$0xf]  ;;  %v2529_v32 = vld [vmem:[#allocation5 + $0x48] sm:$0xf0] }
 0x15b   : > { %1385 = vmatpush.bf16.msrb.mxu2 %v2528_v29  ;;  %1398 = vmatpush.bf16.msrb.mxu3 %v2592_v22 }
 0x1d7   : > { %v1119_v33 = vpop.f32.mrf.mxu0  ;;  %v1132_v34 = vpop.f32.mrf.mxu1 }
 0x1d8   : > { %v1120_v35 = vadd.f32 %v1119_v33, %v921_v23  ;;  %v2532_v23 = vor.u32 %v2987_v31, %v2529_v32  ;;  %v3003_v33 = vld [vmem:[#allocation5 + $0xc4] sm:$0xf] }
 0x1da   : > { %v1133_v39 = vadd.f32 %v1132_v34, %v1120_v35  ;;  %v2593_v34 = vld [vmem:[#allocation5 + $0xc8] sm:$0xf0]  ;;  %1411 = vmatpush.bf16.msra.mxu0 %v2532_v23 }
 0x1db   : > { %v2596_v35 = vor.u32 %v3003_v33, %v2593_v34 }
 0x1dc   : > { %v1093_v37 = vpop.f32.mrf.mxu2  ;;  %v1106_v38 = vpop.f32.mrf.mxu3  ;;  %v3537_v44 = vmax.f32 %v1133_v39, 0.0 }
 0x1dd   : > { %v1094_v40 = vadd.f32 %v1093_v37, %v920_v36  ;;  %v2519_v36 = vld [vmem:[#allocation5 + $0x30] sm:$0xf]  ;;  %v2986_v37 = vld [vmem:[#allocation5 + $0x34] sm:$0xf0]  ;;  %1424 = vmatpush.bf16.msra.mxu1 %v2596_v35  ;;  %v1166_v35 = vld [vmem:[%s3733_s29] sm:$0x3] }
 0x1de   : > { %v1142_v50 = vmul.f32 %v3537_v44, %v3537_v44  ;;  %v2520_v39 = vor.u32 %v2986_v37, %v2519_v36  ;;  %v1174_v37 = vld [vmem:[%s3694_s8] sm:$0x3] }
 0x1df   : > { %v1107_v41 = vadd.f32 %v1106_v38, %v1094_v40  ;;  %v1121_v42 = vpop.f32.mrf.mxu0  ;;  %v1134_v43 = vpop.f32.mrf.mxu1  ;;  %v2583_v38 = vld [vmem:[#allocation5 + $0xb0] sm:$0xf]  ;;  %v3002_v40 = vld [vmem:[#allocation5 + $0xb4] sm:$0xf0] }
 0x1e0   : > { %v2521_v42 = vld [vmem:[#allocation5 + $0x38] sm:$0xf0]  ;;  %v2584_v43 = vor.u32 %v3002_v40, %v2583_v38  ;;  %1386 = vmatpush.bf16.msrb.mxu2 %v2520_v39  ;;  %v1168_v40 = vperm.slane %v1166_v35, 0 }
 0x1e1   : > { %v3539_v45 = vmax.f32 %v1107_v41, 0.0  ;;  %v2985_v41 = vld [vmem:[#allocation5 + $0x34] sm:$0xf] }
 0x1e2   : > { %1399 = vmatpush.bf16.msrb.mxu3 %v2584_v43 }
 0x1e3   : > { %v1138_v46 = vadd.f32 %v3537_v44, %v3539_v45  ;;  %v1141_v49 = vmul.f32 %v3539_v45, %v3539_v45 }
 0x1e4   : > { %v1095_v47 = vpop.f32.mrf.mxu2  ;;  %v1108_v48 = vpop.f32.mrf.mxu3 }
 0x1e5   : > { %1139 = vadd.xlane.f32.xlu1 %v1138_v46  ;;  %v1143_v51 = vadd.f32 %v1142_v50, %v1141_v49  ;;  %v2524_v46 = vor.u32 %v2985_v41, %v2521_v42  ;;  %v3001_v47 = vld [vmem:[#allocation5 + $0xb4] sm:$0xf]  ;;  %v2585_v48 = vld [vmem:[#allocation5 + $0xb8] sm:$0xf0]  ;;  %v2511_v50 = vld [vmem:[#allocation5 + $0x20] sm:$0xf] }
 0x1e6   : > { %v2588_v49 = vor.u32 %v3001_v47, %v2585_v48  ;;  %1400 = vmatpush.bf16.msrb.mxu3 %v2576_v58  ;;  %v1169_v41 = vperm.slane %v1166_v35, 1  ;;  %v1177_v48 = vperm.slane %v1174_v37, 1  ;;  %v3022_v35 = vld [vmem:[#allocation7 + $0x54] sm:$0xf0] }
 0x1e7   : > { %1412 = vmatpush.bf16.msra.mxu0 %v2524_v46  ;;  %v1176_v46 = vperm.slane %v1174_v37, 0 }
 0x1e8   : > { %1425 = vmatpush.bf16.msra.mxu1 %v2588_v49 }
 0x1ea   : > { %1401 = vmatpush.bf16.msrb.mxu3 %v2568_v7 }
 0x1eb   : > { %1413 = vmatpush.bf16.msra.mxu0 %v2516_v59 }
 0x1ec   : > { %1426 = vmatpush.bf16.msra.mxu1 %v2580_v0 }
 0x1ed   : > { %1144 = vadd.xlane.f32.xlu1 %v1143_v51  ;;  %v2984_v51 = vld [vmem:[#allocation5 + $0x24] sm:$0xf0] }
 0x1ee   : > { %v2512_v53 = vor.u32 %v2984_v51, %v2511_v50  ;;  %1402 = vmatpush.bf16.msrb.mxu3 %v2560_v20  ;;  %v2745_v20 = vld [vmem:[#allocation7 + $0xf8] sm:$0xf0] }
 0x1ef   : > { %1414 = vmatpush.bf16.msra.mxu0 %v2508_v11  ;;  %v3026_v11 = vld [vmem:[#allocation7 + $0x74] sm:$0xf0] }
 0x1f0   : > { %1387 = vmatpush.bf16.msrb.mxu2 %v2512_v53  ;;  %1427 = vmatpush.bf16.msra.mxu1 %v2572_v12  ;;  %v2743_v12 = vld [vmem:[#allocation7 + $0xf0] sm:$0xf]  ;;  %v2680_v13 = vor.u32 %v3026_v11, %v2679_v10  ;;  %v2703_v10 = vld [vmem:[#allocation7 + $0xa0] sm:$0xf] }
 0x1f1   : > { %v2744_v17 = vor.u32 %v3042_v14, %v2743_v12  ;;  %v3032_v12 = vld [vmem:[#allocation7 + $0xa4] sm:$0xf0]  ;;  %v2641_v14 = vld [vmem:[#allocation7 + $0x28] sm:$0xf0] }
 0x1f3   : > { %1415 = vmatpush.bf16.msra.mxu0 %v2500_v21  ;;  %v2748_v21 = vor.u32 %v3041_v19, %v2745_v20  ;;  %1693 = vmatpush.bf16.msra.mxu3 %v2744_v17  ;;  %v2705_v19 = vld [vmem:[#allocation7 + $0xa8] sm:$0xf0] }
 0x1f4   : > { %1388 = vmatpush.bf16.msrb.mxu2 %v2504_v3  ;;  %1428 = vmatpush.bf16.msra.mxu1 %v2564_v25  ;;  %v3024_v25 = vld [vmem:[#allocation7 + $0x64] sm:$0xf0] }
 0x1f8   : > { %1389 = vmatpush.bf16.msrb.mxu2 %v2496_v16  ;;  %v2681_v16 = vld [vmem:[#allocation7 + $0x78] sm:$0xf0]  ;;  %1719 = vmatpush.bf16.msrb.mxu1 %v2748_v21 }
 0x1f9   : > { %v2684_v18 = vor.u32 %v3025_v15, %v2681_v16  ;;  %v2704_v16 = vor.u32 %v3032_v12, %v2703_v10 }
 0x1fb   : > { %1706 = vmatpush.bf16.msrb.mxu0 %v2684_v18  ;;  %v3031_v18 = vld [vmem:[#allocation7 + $0xa4] sm:$0xf] }
 0x1fc   : > { %1680 = vmatpush.bf16.msra.mxu2 %v2680_v13  ;;  %v3015_v13 = vld [vmem:[#allocation7 + $0x24] sm:$0xf]  ;;  %v2708_v21 = vor.u32 %v3031_v18, %v2705_v19 }
 0x1fd   : > { %v2644_v17 = vor.u32 %v3015_v13, %v2641_v14 }
 0x258   : > { %v1140_v57 = vpop.xlane.xlu1 %1139 }
 0x259   : > { %v3547_v63 = vmul.f32 0.015625, %v1140_v57 }
 0x25b   : > { %v1148_v27 = vmul.f32 %v3547_v63, %v3547_v63  ;;  %v1151_v38 = vsub.f32 %v3539_v45, %v3547_v63  ;;  %v1152_v39 = vsub.f32 %v3537_v44, %v3547_v63  ;;  %v1216_v44 = vld [vmem:[%s3696_s10] sm:$0x3] }
 0x25c   : > { %v1219_v45 = vperm.slane %v1216_v44, 1  ;;  %v1218_v58 = vperm.slane %v1216_v44, 0 }
 0x260   : > { %v1145_v26 = vpop.xlane.xlu1 %1144 }
 0x261   : > { %v1147_v28 = vmul.f32 0.015625, %v1145_v26  ;;  %v2735_v26 = vld [vmem:[#allocation7 + $0xe0] sm:$0xf] }
 0x263   : > { %v1149_v29 = vsub.f32 %v1147_v28, %v1148_v27  ;;  %v2672_v27 = vor.u32 %v3024_v25, %v2671_v24  ;;  %v3040_v28 = vld [vmem:[#allocation7 + $0xe4] sm:$0xf0]  ;;  %v2631_v24 = vld [vmem:[#allocation7 + $0x10] sm:$0xf]  ;;  %v3014_v25 = vld [vmem:[#allocation7 + $0x14] sm:$0xf0] }
 0x265   : > { %v1150_v30 = vmax.f32 %v1149_v29, 0.0  ;;  %v3023_v29 = vld [vmem:[#allocation7 + $0x64] sm:$0xf]  ;;  %1681 = vmatpush.bf16.msra.mxu2 %v2672_v27  ;;  %v2632_v27 = vor.u32 %v3014_v25, %v2631_v24 }
 0x267   : > { %v1153_v31 = vadd.f32 1e-12, %v1150_v30  ;;  %v2673_v30 = vld [vmem:[#allocation7 + $0x68] sm:$0xf0] }
 0x269   : > { %3145 = vrsqrt.f32 %v1153_v31  ;;  %vm1160_vm5 = vweird.f32 %v1153_v31 }
 0x26f   : > { %v3146_v32 = vpop.eup %3145 }
 0x270   : > { %v1155_v22 = vmul.f32 %v3146_v32, %v1153_v31  ;;  %vm1161_vm4 = vweird.f32 %v3146_v32  ;;  %v2736_v31 = vor.u32 %v3040_v28, %v2735_v26  ;;  %v2695_v26 = vld [vmem:[#allocation7 + $0x90] sm:$0xf]  ;;  %v3030_v28 = vld [vmem:[#allocation7 + $0x94] sm:$0xf0] }
 0x271   : > { %vm1162_vm6 = vmor %vm1160_vm5, %vm1161_vm4 }
 0x272   : > { %v1156_v23 = vmul.f32 %v3146_v32, %v1155_v22  ;;  %v3039_v22 = vld [vmem:[#allocation7 + $0xe4] sm:$0xf]  ;;  %1694 = vmatpush.bf16.msra.mxu3 %v2736_v31  ;;  %v2696_v31 = vor.u32 %v3030_v28, %v2695_v26 }
 0x274   : > { %v1157_v33 = vmul.f32 0.5, %v1156_v23  ;;  %v2737_v23 = vld [vmem:[#allocation7 + $0xe8] sm:$0xf0] }
 0x276   : > { %v1158_v34 = vsub.f32 1.5, %v1157_v33  ;;  %v2740_v33 = vor.u32 %v3039_v22, %v2737_v23  ;;  %v3029_v22 = vld [vmem:[#allocation7 + $0x94] sm:$0xf]  ;;  %v2697_v23 = vld [vmem:[#allocation7 + $0x98] sm:$0xf0] }
 0x278   : > { %v1159_v36 = vmul.f32 %v3146_v32, %v1158_v34  ;;  %v2663_v34 = vld [vmem:[#allocation7 + $0x50] sm:$0xf]  ;;  %1720 = vmatpush.bf16.msrb.mxu1 %v2740_v33  ;;  %v2623_v33 = vld [vmem:[#allocation7] sm:$0xf] }
 0x279   : > { %v2664_v37 = vor.u32 %v3022_v35, %v2663_v34  ;;  %v2700_v34 = vor.u32 %v3029_v22, %v2697_v23  ;;  %v3012_v35 = vld [vmem:[#allocation7 + $0x4] sm:$0xf0]  ;;  %v2807_v23 = vld [vmem:[#allocation8 + $0x70] sm:$0xf] }
 0x27a   : > { %v1163_v42 = vsel %vm1162_vm6, %v3146_v32, %v1159_v36  ;;  %v2676_v32 = vor.u32 %v3023_v29, %v2673_v30  ;;  %v2727_v36 = vld [vmem:[#allocation7 + $0xd0] sm:$0xf]  ;;  %v3013_v29 = vld [vmem:[#allocation7 + $0x14] sm:$0xf]  ;;  %v2633_v30 = vld [vmem:[#allocation7 + $0x18] sm:$0xf0] }
 0x27b   : > { %v1164_v43 = vmul.f32 %v1163_v42, %v1151_v38  ;;  %v1165_v47 = vmul.f32 %v1163_v42, %v1152_v39  ;;  %v3038_v38 = vld [vmem:[#allocation7 + $0xd4] sm:$0xf0]  ;;  %v3021_v39 = vld [vmem:[#allocation7 + $0x54] sm:$0xf]  ;;  %1682 = vmatpush.bf16.msra.mxu2 %v2664_v37  ;;  %v3028_v37 = vld [vmem:[#allocation7 + $0x84] sm:$0xf0] }
 0x27c   : > { %1707 = vmatpush.bf16.msrb.mxu0 %v2676_v32  ;;  %v2636_v32 = vor.u32 %v3013_v29, %v2633_v30 }
 0x27d   : > { %v1172_v49 = vmul.f32 %v1168_v40, %v1164_v43  ;;  %v1173_v50 = vmul.f32 %v1169_v41, %v1165_v47  ;;  %v2665_v40 = vld [vmem:[#allocation7 + $0x58] sm:$0xf0]  ;;  %v2728_v41 = vor.u32 %v3038_v38, %v2727_v36  ;;  %v3037_v43 = vld [vmem:[#allocation7 + $0xd4] sm:$0xf]  ;;  %v2687_v36 = vld [vmem:[#allocation7 + $0x80] sm:$0xf]  ;;  %v2624_v38 = vor.u32 %v3012_v35, %v2623_v33 }
 0x27e   : > { %v2668_v42 = vor.u32 %v3021_v39, %v2665_v40  ;;  %v2688_v39 = vor.u32 %v3028_v37, %v2687_v36  ;;  %v3011_v40 = vld [vmem:[#allocation7 + $0x4] sm:$0xf]  ;;  %v3058_v33 = vld [vmem:[#allocation8 + $0x74] sm:$0xf0]  ;;  %v3057_v37 = vld [vmem:[#allocation8 + $0x74] sm:$0xf] }
 0x27f   : > { %v1180_v51 = vadd.f32 %v1176_v46, %v1172_v49  ;;  %v1181_v52 = vadd.f32 %v1177_v48, %v1173_v50  ;;  %v2729_v46 = vld [vmem:[#allocation7 + $0xd8] sm:$0xf0]  ;;  %1695 = vmatpush.bf16.msra.mxu3 %v2728_v41  ;;  %v2655_v48 = vld [vmem:[#allocation7 + $0x40] sm:$0xf]  ;;  %v3020_v49 = vld [vmem:[#allocation7 + $0x44] sm:$0xf0]  ;;  %v2808_v35 = vor.u32 %v3058_v33, %v2807_v23 }
 0x280   : > { %v2732_v47 = vor.u32 %v3037_v43, %v2729_v46  ;;  %1708 = vmatpush.bf16.msrb.mxu0 %v2668_v42  ;;  %v2719_v50 = vld [vmem:[#allocation7 + $0xc0] sm:$0xf]  ;;  %v2625_v41 = vld [vmem:[#allocation7 + $0x8] sm:$0xf0]  ;;  %v3027_v42 = vld [vmem:[#allocation7 + $0x84] sm:$0xf] }
 0x281   : > { %v1182_v53 = vpack.c.bf16 %v1180_v51, %v1180_v51  ;;  %v1183_v54 = vpack.c.bf16 %v1181_v52, %v1181_v52  ;;  %v2656_v51 = vor.u32 %v3020_v49, %v2655_v48  ;;  %v3036_v52 = vld [vmem:[#allocation7 + $0xc4] sm:$0xf0]  ;;  %v2628_v43 = vor.u32 %v3011_v40, %v2625_v41  ;;  %v2689_v46 = vld [vmem:[#allocation7 + $0x88] sm:$0xf0]  ;;  %v3074_v36 = vld [vmem:[#allocation8 + $0xf4] sm:$0xf0] }
 0x282   : > { %1721 = vmatpush.bf16.msrb.mxu1 %v2732_v47  ;;  %v2720_v44 = vor.u32 %v3036_v52, %v2719_v50  ;;  %v2692_v48 = vor.u32 %v3027_v42, %v2689_v46  ;;  %v3073_v41 = vld [vmem:[#allocation8 + $0xf4] sm:$0xf]  ;;  %v2873_v42 = vld [vmem:[#allocation8 + $0xf8] sm:$0xf0]  ;;  %v2799_v46 = vld [vmem:[#allocation8 + $0x60] sm:$0xf] }
 0x283   : > { %1390 = vmatmul.bf16.vlgmr.msrb.gmra.mxu2 %v1182_v53  ;;  %1403 = vmatmul.bf16.vlgmr.msrb.gmra.mxu3 %v1183_v54  ;;  %v2831_v23 = vld [vmem:[#allocation8 + $0xa0] sm:$0xf] }
 0x284   : > { %1416 = vmatmul.bf16.vlgmr.msra.gmra.mxu0 %v1182_v53  ;;  %1429 = vmatmul.bf16.vlgmr.msra.gmra.mxu1 %v1183_v54  ;;  %v3019_v53 = vld [vmem:[#allocation7 + $0x44] sm:$0xf]  ;;  %v2657_v54 = vld [vmem:[#allocation7 + $0x48] sm:$0xf0] }
 0x285   : > { %1683 = vmatpush.bf16.msra.mxu2 %v2656_v51  ;;  %1696 = vmatpush.bf16.msra.mxu3 %v2720_v44 }
 0x301   : > { %v1417_v55 = vpop.f32.mrf.mxu0  ;;  %v1430_v56 = vpop.f32.mrf.mxu1 }
 0x302   : > { %v1418_v57 = vadd.f32 %v1417_v55, %v1219_v45  ;;  %v2660_v45 = vor.u32 %v3019_v53, %v2657_v54  ;;  %v3035_v55 = vld [vmem:[#allocation7 + $0xc4] sm:$0xf] }
 0x304   : > { %v1431_v61 = vadd.f32 %v1430_v56, %v1418_v57  ;;  %v2721_v56 = vld [vmem:[#allocation7 + $0xc8] sm:$0xf0]  ;;  %1709 = vmatpush.bf16.msrb.mxu0 %v2660_v45 }
 0x305   : > { %v2724_v57 = vor.u32 %v3035_v55, %v2721_v56 }
 0x306   : > { %v1391_v59 = vpop.f32.mrf.mxu2  ;;  %v1404_v60 = vpop.f32.mrf.mxu3  ;;  %v3564_v2 = vmax.f32 %v1431_v61, 0.0 }
 0x307   : > { %v1392_v62 = vadd.f32 %v1391_v59, %v1218_v58  ;;  %v2647_v58 = vld [vmem:[#allocation7 + $0x30] sm:$0xf]  ;;  %v3018_v59 = vld [vmem:[#allocation7 + $0x34] sm:$0xf0]  ;;  %1722 = vmatpush.bf16.msrb.mxu1 %v2724_v57  ;;  %v1464_v57 = vld [vmem:[%s3697_s11] sm:$0x3] }
 0x308   : > { %v1440_v8 = vmul.f32 %v3564_v2, %v3564_v2  ;;  %v2648_v61 = vor.u32 %v3018_v59, %v2647_v58  ;;  %v1472_v59 = vld [vmem:[%s3698_s12] sm:$0x3] }
 0x309   : > { %v1405_v63 = vadd.f32 %v1404_v60, %v1392_v62  ;;  %v1419_v0 = vpop.f32.mrf.mxu0  ;;  %v1432_v1 = vpop.f32.mrf.mxu1  ;;  %v2711_v60 = vld [vmem:[#allocation7 + $0xb0] sm:$0xf]  ;;  %v3034_v62 = vld [vmem:[#allocation7 + $0xb4] sm:$0xf0] }
 0x30a   : > { %v2649_v0 = vld [vmem:[#allocation7 + $0x38] sm:$0xf0]  ;;  %v2712_v1 = vor.u32 %v3034_v62, %v2711_v60  ;;  %1684 = vmatpush.bf16.msra.mxu2 %v2648_v61  ;;  %v1466_v62 = vperm.slane %v1464_v57, 0 }
 0x30b   : > { %v3566_v3 = vmax.f32 %v1405_v63, 0.0  ;;  %v3017_v63 = vld [vmem:[#allocation7 + $0x34] sm:$0xf] }
 0x30c   : > { %1697 = vmatpush.bf16.msra.mxu3 %v2712_v1 }
 0x30d   : > { %v1436_v4 = vadd.f32 %v3564_v2, %v3566_v3  ;;  %v1439_v7 = vmul.f32 %v3566_v3, %v3566_v3 }
 0x30e   : > { %v1393_v5 = vpop.f32.mrf.mxu2  ;;  %v1406_v6 = vpop.f32.mrf.mxu3 }
 0x30f   : > { %1437 = vadd.xlane.f32.xlu2 %v1436_v4  ;;  %v1441_v9 = vadd.f32 %v1440_v8, %v1439_v7  ;;  %v2652_v4 = vor.u32 %v3017_v63, %v2649_v0  ;;  %v3033_v5 = vld [vmem:[#allocation7 + $0xb4] sm:$0xf]  ;;  %v2713_v6 = vld [vmem:[#allocation7 + $0xb8] sm:$0xf0]  ;;  %v2639_v8 = vld [vmem:[#allocation7 + $0x20] sm:$0xf] }
 0x310   : > { %v2716_v7 = vor.u32 %v3033_v5, %v2713_v6  ;;  %1698 = vmatpush.bf16.msra.mxu3 %v2704_v16  ;;  %v1467_v63 = vperm.slane %v1464_v57, 1  ;;  %v1475_v6 = vperm.slane %v1472_v59, 1  ;;  %v3054_v57 = vld [vmem:[#allocation8 + $0x54] sm:$0xf0] }
 0x311   : > { %1710 = vmatpush.bf16.msrb.mxu0 %v2652_v4  ;;  %v1474_v4 = vperm.slane %v1472_v59, 0 }
 0x312   : > { %1723 = vmatpush.bf16.msrb.mxu1 %v2716_v7 }
 0x314   : > { %1699 = vmatpush.bf16.msra.mxu3 %v2696_v31 }
 0x315   : > { %1711 = vmatpush.bf16.msrb.mxu0 %v2644_v17 }
 0x316   : > { %1724 = vmatpush.bf16.msrb.mxu1 %v2708_v21 }
 0x317   : > { %1442 = vadd.xlane.f32.xlu2 %v1441_v9  ;;  %v3016_v9 = vld [vmem:[#allocation7 + $0x24] sm:$0xf0] }
 0x318   : > { %v2640_v11 = vor.u32 %v3016_v9, %v2639_v8  ;;  %1700 = vmatpush.bf16.msra.mxu3 %v2688_v39 }
 0x319   : > { %1712 = vmatpush.bf16.msrb.mxu0 %v2636_v32 }
 0x31a   : > { %1685 = vmatpush.bf16.msra.mxu2 %v2640_v11  ;;  %1725 = vmatpush.bf16.msrb.mxu1 %v2700_v34  ;;  %v2871_v34 = vld [vmem:[#allocation8 + $0xf0] sm:$0xf] }
 0x31b   : > { %v2872_v39 = vor.u32 %v3074_v36, %v2871_v34  ;;  %v3064_v34 = vld [vmem:[#allocation8 + $0xa4] sm:$0xf0]  ;;  %v2769_v36 = vld [vmem:[#allocation8 + $0x28] sm:$0xf0] }
 0x31d   : > { %1713 = vmatpush.bf16.msrb.mxu0 %v2628_v43  ;;  %v2876_v43 = vor.u32 %v3073_v41, %v2873_v42  ;;  %1991 = vmatpush.bf16.msrb.mxu3 %v2872_v39  ;;  %v3063_v39 = vld [vmem:[#allocation8 + $0xa4] sm:$0xf]  ;;  %v2759_v42 = vld [vmem:[#allocation8 + $0x10] sm:$0xf] }
 0x31e   : > { %1686 = vmatpush.bf16.msra.mxu2 %v2632_v27  ;;  %1726 = vmatpush.bf16.msrb.mxu1 %v2692_v48  ;;  %v2863_v48 = vld [vmem:[#allocation8 + $0xe0] sm:$0xf] }
 0x322   : > { %1687 = vmatpush.bf16.msra.mxu2 %v2624_v38  ;;  %v2809_v38 = vld [vmem:[#allocation8 + $0x78] sm:$0xf0]  ;;  %2017 = vmatpush.bf16.msra.mxu1 %v2876_v43  ;;  %v3046_v43 = vld [vmem:[#allocation8 + $0x14] sm:$0xf0] }
 0x323   : > { %v2812_v40 = vor.u32 %v3057_v37, %v2809_v38  ;;  %v2832_v37 = vor.u32 %v3064_v34, %v2831_v23 }
 0x325   : > { %2004 = vmatpush.bf16.msra.mxu0 %v2812_v40  ;;  %v2833_v40 = vld [vmem:[#allocation8 + $0xa8] sm:$0xf0] }
 0x326   : > { %1978 = vmatpush.bf16.msrb.mxu2 %v2808_v35  ;;  %v3047_v35 = vld [vmem:[#allocation8 + $0x24] sm:$0xf]  ;;  %v2836_v41 = vor.u32 %v3063_v39, %v2833_v40 }
 0x327   : > { %v2772_v38 = vor.u32 %v3047_v35, %v2769_v36 }
 0x382   : > { %v1438_v15 = vpop.xlane.xlu2 %1437 }
 0x383   : > { %v3574_v20 = vmul.f32 0.015625, %v1438_v15 }
 0x385   : > { %v1446_v49 = vmul.f32 %v3574_v20, %v3574_v20  ;;  %v1449_v60 = vsub.f32 %v3566_v3, %v3574_v20  ;;  %v1450_v61 = vsub.f32 %v3564_v2, %v3574_v20  ;;  %v1514_v2 = vld [vmem:[%s3700_s14] sm:$0x3] }
 0x386   : > { %v1517_v3 = vperm.slane %v1514_v2, 1  ;;  %v1516_v16 = vperm.slane %v1514_v2, 0 }
 0x38a   : > { %v1443_v47 = vpop.xlane.xlu2 %1442 }
 0x38b   : > { %v1445_v50 = vmul.f32 0.015625, %v1443_v47  ;;  %v3056_v47 = vld [vmem:[#allocation8 + $0x64] sm:$0xf0] }
 0x38d   : > { %v1447_v51 = vsub.f32 %v1445_v50, %v1446_v49  ;;  %v2800_v49 = vor.u32 %v3056_v47, %v2799_v46  ;;  %v3072_v50 = vld [vmem:[#allocation8 + $0xe4] sm:$0xf0]  ;;  %v2823_v46 = vld [vmem:[#allocation8 + $0x90] sm:$0xf]  ;;  %v2760_v47 = vor.u32 %v3046_v43, %v2759_v42 }
 0x38f   : > { %v1448_v52 = vmax.f32 %v1447_v51, 0.0  ;;  %v3055_v51 = vld [vmem:[#allocation8 + $0x64] sm:$0xf]  ;;  %1979 = vmatpush.bf16.msrb.mxu2 %v2800_v49  ;;  %v3045_v49 = vld [vmem:[#allocation8 + $0x14] sm:$0xf] }
 0x391   : > { %v1451_v53 = vadd.f32 1e-12, %v1448_v52  ;;  %v2801_v52 = vld [vmem:[#allocation8 + $0x68] sm:$0xf0] }
 0x393   : > { %3147 = vrsqrt.f32 %v1451_v53  ;;  %vm1458_vm8 = vweird.f32 %v1451_v53 }
 0x399   : > { %v3148_v54 = vpop.eup %3147 }
 0x39a   : > { %v1453_v44 = vmul.f32 %v3148_v54, %v1451_v53  ;;  %vm1459_vm7 = vweird.f32 %v3148_v54  ;;  %v2864_v53 = vor.u32 %v3072_v50, %v2863_v48  ;;  %v3062_v48 = vld [vmem:[#allocation8 + $0x94] sm:$0xf0]  ;;  %v2761_v50 = vld [vmem:[#allocation8 + $0x18] sm:$0xf0] }
 0x39b   : > { %vm1460_vm9 = vmor %vm1458_vm8, %vm1459_vm7 }
 0x39c   : > { %v1454_v45 = vmul.f32 %v3148_v54, %v1453_v44  ;;  %v3071_v44 = vld [vmem:[#allocation8 + $0xe4] sm:$0xf]  ;;  %1992 = vmatpush.bf16.msrb.mxu3 %v2864_v53  ;;  %v3061_v53 = vld [vmem:[#allocation8 + $0x94] sm:$0xf] }
 0x39e   : > { %v1455_v55 = vmul.f32 0.5, %v1454_v45  ;;  %v2865_v45 = vld [vmem:[#allocation8 + $0xe8] sm:$0xf0] }
 0x3a0   : > { %v1456_v56 = vsub.f32 1.5, %v1455_v55  ;;  %v2868_v55 = vor.u32 %v3071_v44, %v2865_v45  ;;  %v2751_v44 = vld [vmem:[#allocation8] sm:$0xf] }
 0x3a2   : > { %v1457_v58 = vmul.f32 %v3148_v54, %v1456_v56  ;;  %v2791_v56 = vld [vmem:[#allocation8 + $0x50] sm:$0xf]  ;;  %2018 = vmatpush.bf16.msra.mxu1 %v2868_v55  ;;  %v3044_v55 = vld [vmem:[#allocation8 + $0x4] sm:$0xf0] }
 0x3a3   : > { %v2792_v59 = vor.u32 %v3054_v57, %v2791_v56  ;;  %v2815_v56 = vld [vmem:[#allocation8 + $0x80] sm:$0xf]  ;;  %v3060_v57 = vld [vmem:[#allocation8 + $0x84] sm:$0xf0] }
 0x3a4   : > { %v1461_v0 = vsel %vm1460_vm9, %v3148_v54, %v1457_v58  ;;  %v2804_v54 = vor.u32 %v3055_v51, %v2801_v52  ;;  %v2855_v58 = vld [vmem:[#allocation8 + $0xd0] sm:$0xf]  ;;  %v2824_v51 = vor.u32 %v3062_v48, %v2823_v46  ;;  %v2764_v52 = vor.u32 %v3045_v49, %v2761_v50 }
 0x3a5   : > { %v1462_v1 = vmul.f32 %v1461_v0, %v1449_v60  ;;  %v1463_v5 = vmul.f32 %v1461_v0, %v1450_v61  ;;  %v3070_v60 = vld [vmem:[#allocation8 + $0xd4] sm:$0xf0]  ;;  %v3053_v61 = vld [vmem:[#allocation8 + $0x54] sm:$0xf]  ;;  %1980 = vmatpush.bf16.msrb.mxu2 %v2792_v59  ;;  %v2752_v59 = vor.u32 %v3044_v55, %v2751_v44 }
 0x3a6   : > { %2005 = vmatpush.bf16.msra.mxu0 %v2804_v54  ;;  %v2825_v54 = vld [vmem:[#allocation8 + $0x98] sm:$0xf0] }
 0x3a7   : > { %v1470_v7 = vmul.f32 %v1466_v62, %v1462_v1  ;;  %v1471_v8 = vmul.f32 %v1467_v63, %v1463_v5  ;;  %v2793_v62 = vld [vmem:[#allocation8 + $0x58] sm:$0xf0]  ;;  %v2856_v63 = vor.u32 %v3070_v60, %v2855_v58  ;;  %v3069_v1 = vld [vmem:[#allocation8 + $0xd4] sm:$0xf]  ;;  %v2828_v45 = vor.u32 %v3061_v53, %v2825_v54 }
 0x3a8   : > { %v2796_v0 = vor.u32 %v3053_v61, %v2793_v62  ;;  %v2816_v60 = vor.u32 %v3060_v57, %v2815_v56  ;;  %v3043_v61 = vld [vmem:[#allocation8 + $0x4] sm:$0xf]  ;;  %v2753_v62 = vld [vmem:[#allocation8 + $0x8] sm:$0xf0]  ;;  %v3090_v55 = vld [vmem:[%s3707_s21 + $0x78] sm:$0xff] }
 0x3a9   : > { %v1478_v9 = vadd.f32 %v1474_v4, %v1470_v7  ;;  %v1479_v10 = vadd.f32 %v1475_v6, %v1471_v8  ;;  %v2857_v4 = vld [vmem:[#allocation8 + $0xd8] sm:$0xf0]  ;;  %1993 = vmatpush.bf16.msrb.mxu3 %v2856_v63  ;;  %v2783_v6 = vld [vmem:[#allocation8 + $0x40] sm:$0xf]  ;;  %v3052_v7 = vld [vmem:[#allocation8 + $0x44] sm:$0xf0] }
 0x3aa   : > { %v2860_v5 = vor.u32 %v3069_v1, %v2857_v4  ;;  %2006 = vmatpush.bf16.msra.mxu0 %v2796_v0  ;;  %v2847_v8 = vld [vmem:[#allocation8 + $0xc0] sm:$0xf]  ;;  %v3059_v63 = vld [vmem:[#allocation8 + $0x84] sm:$0xf]  ;;  %v2756_v1 = vor.u32 %v3043_v61, %v2753_v62  ;;  %v2817_v4 = vld [vmem:[#allocation8 + $0x88] sm:$0xf0] }
 0x3ab   : > { %v1480_v11 = vpack.c.bf16 %v1478_v9, %v1478_v9  ;;  %v1481_v12 = vpack.c.bf16 %v1479_v10, %v1479_v10  ;;  %v2784_v9 = vor.u32 %v3052_v7, %v2783_v6  ;;  %v3068_v10 = vld [vmem:[#allocation8 + $0xc4] sm:$0xf0]  ;;  %v2820_v6 = vor.u32 %v3059_v63, %v2817_v4  ;;  %v3081_v56 = vld [vmem:[%s3707_s21 + $0x30] sm:$0xff]  ;;  %v3087_v61 = vld [vmem:[%s3707_s21 + $0x60] sm:$0xff] }
 0x3ac   : > { %2019 = vmatpush.bf16.msra.mxu1 %v2860_v5  ;;  %v2848_v2 = vor.u32 %v3068_v10, %v2847_v8  ;;  %v3089_v57 = vld [vmem:[%s3707_s21 + $0x70] sm:$0xff]  ;;  %v3078_v62 = vld [vmem:[%s3707_s21 + $0x18] sm:$0xff]  ;;  %v3076_v4 = vld [vmem:[%s3707_s21 + $0x8] sm:$0xff] }
 0x3ad   : > { %1688 = vmatmul.bf16.vlgmr.msra.gmra.mxu2 %v1480_v11  ;;  %1701 = vmatmul.bf16.vlgmr.msra.gmra.mxu3 %v1481_v12  ;;  %v3086_v63 = vld [vmem:[%s3707_s21 + $0x58] sm:$0xff] }
 0x3ae   : > { %1714 = vmatmul.bf16.vlgmr.msrb.gmra.mxu0 %v1480_v11  ;;  %1727 = vmatmul.bf16.vlgmr.msrb.gmra.mxu1 %v1481_v12  ;;  %v3051_v11 = vld [vmem:[#allocation8 + $0x44] sm:$0xf]  ;;  %v2785_v12 = vld [vmem:[#allocation8 + $0x48] sm:$0xf0] }
 0x3af   : > { %1981 = vmatpush.bf16.msrb.mxu2 %v2784_v9  ;;  %1994 = vmatpush.bf16.msrb.mxu3 %v2848_v2 }
 0x42b   : > { %v1715_v13 = vpop.f32.mrf.mxu0  ;;  %v1728_v14 = vpop.f32.mrf.mxu1 }
 0x42c   : > { %v1716_v15 = vadd.f32 %v1715_v13, %v1517_v3  ;;  %v2788_v3 = vor.u32 %v3051_v11, %v2785_v12  ;;  %v3067_v13 = vld [vmem:[#allocation8 + $0xc4] sm:$0xf] }
 0x42e   : > { %v1729_v17 = vadd.f32 %v1728_v14, %v1716_v15  ;;  %v2849_v14 = vld [vmem:[#allocation8 + $0xc8] sm:$0xf0]  ;;  %2007 = vmatpush.bf16.msra.mxu0 %v2788_v3 }
 0x42f   : > { %v2852_v15 = vor.u32 %v3067_v13, %v2849_v14 }
 0x430   : > { %v1689_v18 = vpop.f32.mrf.mxu2  ;;  %v1702_v19 = vpop.f32.mrf.mxu3  ;;  %v3591_v21 = vmax.f32 %v1729_v17, 0.0  ;;  %v3050_v17 = vld [vmem:[#allocation8 + $0x34] sm:$0xf0] }
 0x431   : > { %v1690_v20 = vadd.f32 %v1689_v18, %v1516_v16  ;;  %v2775_v16 = vld [vmem:[#allocation8 + $0x30] sm:$0xf]  ;;  %2020 = vmatpush.bf16.msra.mxu1 %v2852_v15  ;;  %v1762_v15 = vld [vmem:[%s3701_s15] sm:$0x3] }
 0x432   : > { %v1738_v30 = vmul.f32 %v3591_v21, %v3591_v21  ;;  %v2839_v18 = vld [vmem:[#allocation8 + $0xb0] sm:$0xf] }
 0x433   : > { %v1703_v24 = vadd.f32 %v1702_v19, %v1690_v20  ;;  %v1717_v25 = vpop.f32.mrf.mxu0  ;;  %v1730_v26 = vpop.f32.mrf.mxu1  ;;  %v2776_v19 = vor.u32 %v3050_v17, %v2775_v16  ;;  %v3066_v20 = vld [vmem:[#allocation8 + $0xb4] sm:$0xf0]  ;;  %v1770_v17 = vld [vmem:[%s3702_s16] sm:$0x3] }
 0x434   : > { %v2777_v25 = vld [vmem:[#allocation8 + $0x38] sm:$0xf0]  ;;  %v2840_v26 = vor.u32 %v3066_v20, %v2839_v18  ;;  %v1764_v20 = vperm.slane %v1762_v15, 0 }
 0x435   : > { %v3593_v27 = vmax.f32 %v1703_v24, 0.0  ;;  %v3049_v24 = vld [vmem:[#allocation8 + $0x34] sm:$0xf]  ;;  %1982 = vmatpush.bf16.msrb.mxu2 %v2776_v19 }
 0x436   : > { %1995 = vmatpush.bf16.msrb.mxu3 %v2840_v26 }
 0x437   : > { %v1734_v28 = vadd.f32 %v3591_v21, %v3593_v27  ;;  %v1737_v29 = vmul.f32 %v3593_v27, %v3593_v27 }
 0x438   : > { %v1691_v31 = vpop.f32.mrf.mxu2  ;;  %v1704_v32 = vpop.f32.mrf.mxu3 }
 0x439   : > { %1735 = vadd.xlane.f32.xlu0 %v1734_v28  ;;  %v1739_v22 = vadd.f32 %v1738_v30, %v1737_v29  ;;  %v2780_v28 = vor.u32 %v3049_v24, %v2777_v25  ;;  %v3065_v29 = vld [vmem:[#allocation8 + $0xb4] sm:$0xf]  ;;  %v2841_v30 = vld [vmem:[#allocation8 + $0xb8] sm:$0xf0]  ;;  %v2767_v32 = vld [vmem:[#allocation8 + $0x20] sm:$0xf] }
 0x43a   : > { %v2844_v31 = vor.u32 %v3065_v29, %v2841_v30  ;;  %1996 = vmatpush.bf16.msrb.mxu3 %v2832_v37  ;;  %v1765_v24 = vperm.slane %v1762_v15, 1  ;;  %v1772_v29 = vperm.slane %v1770_v17, 0  ;;  %v1773_v30 = vperm.slane %v1770_v17, 1 }
 0x43b   : > { %1740 = vadd.xlane.f32.xlu1 %v1739_v22  ;;  %2008 = vmatpush.bf16.msra.mxu0 %v2780_v28  ;;  %v3048_v22 = vld [vmem:[#allocation8 + $0x24] sm:$0xf0] }
 0x43c   : > { %2021 = vmatpush.bf16.msra.mxu1 %v2844_v31  ;;  %v2768_v33 = vor.u32 %v3048_v22, %v2767_v32 }
 0x43e   : > { %1983 = vmatpush.bf16.msrb.mxu2 %v2768_v33  ;;  %1997 = vmatpush.bf16.msrb.mxu3 %v2824_v51 }
 0x43f   : > { %2009 = vmatpush.bf16.msra.mxu0 %v2772_v38 }
 0x440   : > { %2022 = vmatpush.bf16.msra.mxu1 %v2836_v41 }
 0x442   : > { %1984 = vmatpush.bf16.msrb.mxu2 %v2760_v47  ;;  %1998 = vmatpush.bf16.msrb.mxu3 %v2816_v60  ;;  %v3079_v60 = vld [vmem:[%s3707_s21 + $0x20] sm:$0xff] }
 0x443   : > { %2010 = vmatpush.bf16.msra.mxu0 %v2764_v52 }
 0x444   : > { %2023 = vmatpush.bf16.msra.mxu1 %v2828_v45  ;;  %v3082_v45 = vld [vmem:[%s3707_s21 + $0x38] sm:$0xff] }
 0x446   : > { %1985 = vmatpush.bf16.msrb.mxu2 %v2752_v59  ;;  %2223 = vmatpush.bf16.msra.mxu3 %v3090_v55  ;;  %v3088_v59 = vld [vmem:[%s3707_s21 + $0x68] sm:$0xff] }
 0x447   : > { %2011 = vmatpush.bf16.msra.mxu0 %v2756_v1  ;;  %v3085_v1 = vld [vmem:[%s3707_s21 + $0x50] sm:$0xff] }
 0x448   : > { %2024 = vmatpush.bf16.msra.mxu1 %v2820_v6  ;;  %v3075_v6 = vld [vmem:[%s3707_s21] sm:$0xff] }
 0x44a   : > { %2210 = vmatpush.bf16.msra.mxu2 %v3082_v45  ;;  %2224 = vmatpush.bf16.msra.mxu3 %v3089_v57 }
 0x44e   : > { %2211 = vmatpush.bf16.msra.mxu2 %v3081_v56  ;;  %2225 = vmatpush.bf16.msra.mxu3 %v3088_v59 }
 0x452   : > { %2226 = vmatpush.bf16.msra.mxu3 %v3087_v61 }
 0x456   : > { %2227 = vmatpush.bf16.msra.mxu3 %v3086_v63 }
 0x45a   : > { %2228 = vmatpush.bf16.msra.mxu3 %v3085_v1 }
 0x4ac   : > { %v1736_v58 = vpop.xlane.xlu0 %1735 }
 0x4ad   : > { %v1742_v0 = vmul.f32 0.015625, %v1736_v58  ;;  %v3080_v58 = vld [vmem:[%s3707_s21 + $0x28] sm:$0xff] }
 0x4ae   : > { %v1741_v5 = vpop.xlane.xlu1 %1740  ;;  %2212 = vmatpush.bf16.msra.mxu2 %v3080_v58 }
 0x4af   : > { %v1743_v7 = vmul.f32 0.015625, %v1741_v5  ;;  %v1744_v8 = vmul.f32 %v1742_v0, %v1742_v0  ;;  %v1747_v18 = vsub.f32 %v3593_v27, %v1742_v0  ;;  %v1748_v19 = vsub.f32 %v3591_v21, %v1742_v0  ;;  %v1812_v21 = vld [vmem:[%s3704_s18] sm:$0x3]  ;;  %v3077_v0 = vld [vmem:[%s3707_s21 + $0x10] sm:$0xff]  ;;  %v3084_v5 = vld [vmem:[%s3707_s21 + $0x48] sm:$0xff] }
 0x4b0   : > { %v1815_v27 = vperm.slane %v1812_v21, 1  ;;  %v1814_v38 = vperm.slane %v1812_v21, 0  ;;  %2229 = vmatpush.bf16.msra.mxu3 %v3084_v5 }
 0x4b1   : > { %v1745_v9 = vsub.f32 %v1743_v7, %v1744_v8  ;;  %v3083_v7 = vld [vmem:[%s3707_s21 + $0x40] sm:$0xff] }
 0x4b2   : > { %2213 = vmatpush.bf16.msra.mxu2 %v3079_v60 }
 0x4b3   : > { %v1746_v10 = vmax.f32 %v1745_v9, 0.0 }
 0x4b4   : > { %2230 = vmatpush.bf16.msra.mxu3 %v3083_v7 }
 0x4b5   : > { %v1749_v11 = vadd.f32 1e-12, %v1746_v10 }
 0x4b6   : > { %2214 = vmatpush.bf16.msra.mxu2 %v3078_v62 }
 0x4b7   : > { %3149 = vrsqrt.f32 %v1749_v11  ;;  %vm1756_vm11 = vweird.f32 %v1749_v11 }
 0x4ba   : > { %2215 = vmatpush.bf16.msra.mxu2 %v3077_v0 }
 0x4bd   : > { %v3150_v12 = vpop.eup %3149 }
 0x4be   : > { %v1751_v2 = vmul.f32 %v3150_v12, %v1749_v11  ;;  %vm1757_vm10 = vweird.f32 %v3150_v12  ;;  %2216 = vmatpush.bf16.msra.mxu2 %v3076_v4 }
 0x4bf   : > { %vm1758_vm12 = vmor %vm1756_vm11, %vm1757_vm10 }
 0x4c0   : > { %v1752_v3 = vmul.f32 %v3150_v12, %v1751_v2 }
 0x4c2   : > { %v1753_v13 = vmul.f32 0.5, %v1752_v3  ;;  %2217 = vmatpush.bf16.msra.mxu2 %v3075_v6 }
 0x4c4   : > { %v1754_v14 = vsub.f32 1.5, %v1753_v13 }
 0x4c6   : > { %v1755_v16 = vmul.f32 %v3150_v12, %v1754_v14 }
 0x4c8   : > { %v1759_v25 = vsel %vm1758_vm12, %v3150_v12, %v1755_v16 }
 0x4c9   : > { %v1760_v26 = vmul.f32 %v1759_v25, %v1747_v18  ;;  %v1761_v28 = vmul.f32 %v1759_v25, %v1748_v19  ;;  %v2060_v19 = vld [vmem:[%s3705_s19] sm:$0x3] }
 0x4cb   : > { %v1768_v31 = vmul.f32 %v1764_v20, %v1760_v26  ;;  %v1769_v32 = vmul.f32 %v1765_v24, %v1761_v28  ;;  %v2068_v24 = vld [vmem:[%s3706_s20] sm:$0x3]  ;;  %v2062_v28 = vperm.slane %v2060_v19, 0 }
 0x4cd   : > { %v1776_v22 = vadd.f32 %v1772_v29, %v1768_v31  ;;  %v1777_v23 = vadd.f32 %v1773_v30, %v1769_v32  ;;  %v2063_v29 = vperm.slane %v2060_v19, 1 }
 0x4cf   : > { %v1778_v33 = vpack.c.bf16 %v1776_v22, %v1776_v22  ;;  %v1779_v34 = vpack.c.bf16 %v1777_v23, %v1777_v23  ;;  %v2070_v22 = vperm.slane %v2068_v24, 0  ;;  %v2071_v23 = vperm.slane %v2068_v24, 1 }
 0x4d1   : > { %1986 = vmatmul.bf16.vlgmr.msrb.gmra.mxu2 %v1778_v33  ;;  %1999 = vmatmul.bf16.vlgmr.msrb.gmra.mxu3 %v1779_v34 }
 0x4d2   : > { %2012 = vmatmul.bf16.vlgmr.msra.gmra.mxu0 %v1778_v33  ;;  %2025 = vmatmul.bf16.vlgmr.msra.gmra.mxu1 %v1779_v34 }
 0x54f   : > { %v2013_v35 = vpop.f32.mrf.mxu0  ;;  %v2026_v36 = vpop.f32.mrf.mxu1 }
 0x550   : > { %v2014_v37 = vadd.f32 %v2013_v35, %v1815_v27 }
 0x552   : > { %v2027_v39 = vadd.f32 %v2026_v36, %v2014_v37  ;;  %v3142_v37 = vld [vmem:[#allocation2] ss:$0 sm:$0xff] }
 0x554   : > { %v1987_v40 = vpop.f32.mrf.mxu2  ;;  %v2000_v41 = vpop.f32.mrf.mxu3  ;;  %v3612_v43 = vmax.f32 %v2027_v39, 0.0 }
 0x555   : > { %v1988_v42 = vadd.f32 %v1987_v40, %v1814_v38 }
 0x556   : > { %v2036_v52 = vmul.f32 %v3612_v43, %v3612_v43 }
 0x557   : > { %v2001_v46 = vadd.f32 %v2000_v41, %v1988_v42  ;;  %v2015_v47 = vpop.f32.mrf.mxu0  ;;  %v2028_v48 = vpop.f32.mrf.mxu1 }
 0x559   : > { %v3614_v49 = vmax.f32 %v2001_v46, 0.0 }
 0x55b   : > { %v2032_v50 = vadd.f32 %v3612_v43, %v3614_v49  ;;  %v2035_v51 = vmul.f32 %v3614_v49, %v3614_v49 }
 0x55c   : > { %v1989_v53 = vpop.f32.mrf.mxu2  ;;  %v2002_v54 = vpop.f32.mrf.mxu3 }
 0x55d   : > { %2033 = vadd.xlane.f32.xlu2 %v2032_v50  ;;  %v2037_v44 = vadd.f32 %v2036_v52, %v2035_v51 }
 0x55f   : > { %2038 = vadd.xlane.f32.xlu0 %v2037_v44 }
 0x5d0   : > { %v2034_v8 = vpop.xlane.xlu2 %2033 }
 0x5d1   : > { %v2040_v9 = vmul.f32 0.015625, %v2034_v8 }
 0x5d2   : > { %v2039_v10 = vpop.xlane.xlu0 %2038 }
 0x5d3   : > { %v2041_v11 = vmul.f32 0.015625, %v2039_v10  ;;  %v2042_v12 = vmul.f32 %v2040_v9, %v2040_v9  ;;  %v2045_v25 = vsub.f32 %v3614_v49, %v2040_v9  ;;  %v2046_v26 = vsub.f32 %v3612_v43, %v2040_v9 }
 0x5d5   : > { %v2043_v2 = vsub.f32 %v2041_v11, %v2042_v12 }
 0x5d7   : > { %v2044_v3 = vmax.f32 %v2043_v2, 0.0 }
 0x5d9   : > { %v2047_v13 = vadd.f32 1e-12, %v2044_v3 }
 0x5db   : > { %3151 = vrsqrt.f32 %v2047_v13  ;;  %vm2054_vm14 = vweird.f32 %v2047_v13 }
 0x5e1   : > { %v3152_v14 = vpop.eup %3151 }
 0x5e2   : > { %v2049_v15 = vmul.f32 %v3152_v14, %v2047_v13  ;;  %vm2055_vm13 = vweird.f32 %v3152_v14 }
 0x5e3   : > { %vm2056_vm15 = vmor %vm2054_vm14, %vm2055_vm13 }
 0x5e4   : > { %v2050_v16 = vmul.f32 %v3152_v14, %v2049_v15 }
 0x5e6   : > { %v2051_v17 = vmul.f32 0.5, %v2050_v16 }
 0x5e8   : > { %v2052_v18 = vsub.f32 1.5, %v2051_v17 }
 0x5ea   : > { %v2053_v20 = vmul.f32 %v3152_v14, %v2052_v18 }
 0x5ec   : > { %v2057_v30 = vsel %vm2056_vm15, %v3152_v14, %v2053_v20 }
 0x5ed   : > { %v2058_v31 = vmul.f32 %v2057_v30, %v2045_v25  ;;  %v2059_v32 = vmul.f32 %v2057_v30, %v2046_v26 }
 0x5ef   : > { %v2066_v33 = vmul.f32 %v2062_v28, %v2058_v31  ;;  %v2067_v34 = vmul.f32 %v2063_v29, %v2059_v32 }
 0x5f1   : > { %v2074_v21 = vadd.f32 %v2070_v22, %v2066_v33  ;;  %v2075_v27 = vadd.f32 %v2071_v23, %v2067_v34 }
 0x5f3   : > { %v2076_v35 = vpack.c.bf16 %v2074_v21, %v2074_v21  ;;  %v2077_v36 = vpack.c.bf16 %v2075_v27, %v2075_v27 }
 0x5f5   : > { %2218 = vmatmul.bf16.vlgmr.msra.gmra.mxu2 %v2076_v35  ;;  %2231 = vmatmul.bf16.vlgmr.msra.gmra.mxu3 %v2077_v36 }
 0x678   : > { %v2219_v38 = vpop.f32.mrf.mxu2  ;;  %v2232_v39 = vpop.f32.mrf.mxu3 }
 0x679   : > { %v2220_v40 = vadd.f32 %v3142_v37, %v2219_v38 }
 0x67b   : > { %v2233_v41 = vadd.f32 %v2232_v39, %v2220_v40 }
 0x67d   : > { %2237 = vst.msk [vmem:[%s774_s23] sm:$0xff] %vm2236_vm0, %v2233_v41 }
 0x680   : > { %v2221_v42 = vpop.f32.mrf.mxu2  ;;  %v2234_v43 = vpop.f32.mrf.mxu3 }
 0x681 PF: > { %s3735_s24 = sld [smem:[#allocation13_spill]] }
 0x687   : > { %s38_s24 = sadd.s32 1, %s3735_s24  }
 0x688   : > { %p35_p7 = scmp.ge.s32.totalorder %s38_s24, 4  }
 0x68a   :  { %37 = sbr.rel (!%p35_p7) target bundleno = 14 (0xe), region = 159 }
 0x68f   :  { %2257 = vsyncpa [#allocation4], 1 }
 0x690   :  { %2259 = vsyncpa [#allocation4 + $0x1], 1 }
 0x691   :  { %2260 = vsyncpa [#allocation6], 1 }
 0x692   :  { %2261 = vsyncpa [#allocation9], 1 }

</bundles_post_ra>
